<compile_context>
chip_gen: v6e
topology: v6e:2x2x1
jax: 0.10.0
libtpu: 0.0.40
codegen_flags: <defaults>
</compile_context>

<pallas_src>
import jax
import jax.numpy as jnp
from jax.experimental import pallas as pl
from jax.experimental.pallas import tpu as pltpu  # noqa: F401  (no TPU-specific params needed at this size)

# Model hyper-parameters (small, synthetic).
N_LAYER = 2
N_HEAD = 4
D_MODEL = 32
D_FF = 64
SEQ = 8
BATCH = 2
D_HEAD = D_MODEL // N_HEAD
LN_EPS = 1e-5
NEG_INF = -1e9

_PARAMS_PER_LAYER = 12  # wqkv, bqkv, wo, bo, g1, be1, w1, b1, w2, b2, g2, be2


def _layer_norm(h, gamma, beta):
    # Single-pass variance (mean(h*h) - mu*mu): both cross-lane reductions can
    # issue back-to-back instead of serializing reduce -> square -> reduce.
    mu = jnp.mean(h, axis=-1, keepdims=True)
    var = jnp.mean(h * h, axis=-1, keepdims=True) - mu * mu
    return (h - mu) * jax.lax.rsqrt(var + LN_EPS) * gamma + beta


def _encoder_stack_kernel(x_ref, bias_ref, qsel_ref, *rest):
    """Runs every encoder block on the full (B*S, D) activation in VMEM.

    x_ref    : (B*S, D)        input activations
    bias_ref : (H*B*S, B*S)    additive attention bias, rows are (head, query
                               token), cols are key tokens; cross-batch and
                               padding-masked pairs are already -1e9.
    qsel_ref : (H*B*S, D)      constant 0/1 head-block selector: row block h
                               keeps only features of head h.
    rest     = (n_layer * 12 weight refs) + (output ref,).
    Per-layer weight order:
      wqkv (D,3D), bqkv (1,3D), wo (D,D), bo (1,D), g1 (1,D), be1 (1,D),
      w1 (D,Dff), b1 (1,Dff), w2 (Dff,D), b2 (1,D), g2 (1,D), be2 (1,D)
    (the Q columns of wqkv/bqkv are pre-scaled by 1/sqrt(d_head)).
    """
    w_refs = rest[:-1]
    o_ref = rest[-1]

    BS, D = x_ref.shape
    d_head = D // N_HEAD
    n_layer = len(w_refs) // _PARAMS_PER_LAYER

    h = x_ref[...]          # (B*S, D) -- resident across all layers
    bias = bias_ref[...]    # (H*BS, BS) additive mask, loaded once
    qsel = qsel_ref[...]    # (H*BS, D)  head-block selector, loaded once

    for l in range(n_layer):
        (wqkv, bqkv, wo, bo, g1, be1,
         w1, b1, w2, b2, g2, be2) = [
            r[...] for r in w_refs[l * _PARAMS_PER_LAYER:(l + 1) * _PARAMS_PER_LAYER]]

        # ---- fused Q|K|V projection: one MXU push -----------------------
        qkv = jnp.dot(h, wqkv, preferred_element_type=jnp.float32) + bqkv  # (BS, 3D)

        qn = qkv[:, 0:D]                                   # (BS, D), scale pre-folded
        kT = qkv[:, D:2 * D].T                             # (D, BS)
        vT = qkv[:, 2 * D:3 * D].T.reshape(N_HEAD, d_head, BS)   # (H, dh, BS)

        # ---- scores for ALL heads in ONE matmul -------------------------
        # Qbig row block h = Q masked to head-h features, so row (h, q) of
        # S contracts only over that head's d_head features of K.
        qbig = jnp.concatenate([qn] * N_HEAD, axis=0) * qsel        # (H*BS, D)
        s = jnp.dot(qbig, kT, preferred_element_type=jnp.float32) + bias  # (H*BS, BS)

        # ---- softmax over keys (per (head, query) row) -------------------
        s = s - jnp.max(s, axis=-1, keepdims=True)
        p = jnp.exp(s)
        p = p * pl.reciprocal(jnp.sum(p, axis=-1, keepdims=True), approx=True)
        p3 = p.reshape(N_HEAD, BS, BS)                     # vreg-aligned sublane split

        # ---- PV product for ALL heads: one batched einsum -----------------
        # contract-last-dims form ('bqd,bkd->bqk' class): safe MXU lowering.
        oT = jnp.einsum('hdk,hqk->hdq', vT, p3,
                        preferred_element_type=jnp.float32)          # (H, dh, BS)
        attn = oT.reshape(D, BS).T                          # (BS, D), head-major feats
        attn = jnp.dot(attn, wo, preferred_element_type=jnp.float32) + bo

        # ---- residual + LayerNorm 1 --------------------------------------
        h1 = _layer_norm(h + attn, g1, be1)

        # ---- position-wise FFN (ReLU) ------------------------------------
        f = jnp.dot(h1, w1, preferred_element_type=jnp.float32) + b1
        f = jnp.maximum(f, 0.0)
        f = jnp.dot(f, w2, preferred_element_type=jnp.float32) + b2

        # ---- residual + LayerNorm 2 --------------------------------------
        h = _layer_norm(h1 + f, g2, be2)

    o_ref[...] = h


def _flatten_layer(p):
    scale = 1.0 / (float(D_HEAD) ** 0.5)
    # Fold the attention scale into the Q projection (weights AND bias).
    wqkv = jnp.concatenate([p["wq"] * scale, p["wk"], p["wv"]], axis=1)   # (D, 3D)
    bqkv = jnp.concatenate([p["bq"] * scale, p["bk"], p["bv"]], axis=1)   # (1, 3D)
    return [wqkv, bqkv, p["wo"], p["bo"], p["g1"], p["be1"],
            p["w1"], p["b1"], p["w2"], p["b2"], p["g2"], p["be2"]]


@jax.jit
def encoder_forward(src, src_mask, layer_params_list):
    """Mirrors Encoder.forward (sequentially applies every encoder block),
    fused into a single Pallas kernel invocation."""
    B, S, D = src.shape
    BS = B * S
    x2d = src.reshape(BS, D)

    # ---- additive mask at the folded-head shape (H*BS, BS) ----------------
    keep = src_mask.astype(jnp.float32)                     # (B, S, S), 1=attend
    pos = jnp.arange(BS)
    b_of = pos // S
    s_of = pos % S
    same_batch = b_of[:, None] == b_of[None, :]
    keep_flat = keep[b_of[:, None], s_of[:, None], s_of[None, :]] > 0.5   # (BS, BS)
    bias_bs = jnp.where(same_batch & keep_flat, 0.0, NEG_INF).astype(jnp.float32)
    bias = jnp.tile(bias_bs, (N_HEAD, 1))                   # (H*BS, BS)

    # ---- constant head-block selector for the folded score matmul ---------
    row_head = jnp.arange(N_HEAD * BS) // BS                # head of each score row
    col_head = jnp.arange(D) // D_HEAD                      # head of each feature col
    qsel = (row_head[:, None] == col_head[None, :]).astype(jnp.float32)   # (H*BS, D)

    flat_weights = []
    for p in layer_params_list:
        flat_weights += _flatten_layer(p)

    # No grid: whole problem (all layers, full batch) in one invocation; every
    # operand is a full-array VMEM ref (total working set << 1 MiB).
    out2d = pl.pallas_call(
        _encoder_stack_kernel,
        out_shape=jax.ShapeDtypeStruct((BS, D), jnp.float32),
    )(x2d, bias, qsel, *flat_weights)
    return out2d.reshape(B, S, D)


def _reference_forward(src, src_mask, layer_params_list):
    """Plain-JAX reference (per-batch, per-head) for a sanity check."""
    B, S, D = src.shape
    scale = 1.0 / (float(D_HEAD) ** 0.5)
    add_bias = (src_mask.astype(jnp.float32) - 1.0) * 1e9   # (B,S,S)
    out = src
    for p in layer_params_list:
        x = out.reshape(B * S, D)

        def split(t):
            return t.reshape(B, S, N_HEAD, D_HEAD).transpose(0, 2, 1, 3)

        qh = split(x @ p["wq"] + p["bq"])
        kh = split(x @ p["wk"] + p["bk"])
        vh = split(x @ p["wv"] + p["bv"])
        s = jnp.einsum('bhqd,bhkd->bhqk', qh, kh) * scale + add_bias[:, None, :, :]
        attn_p = jax.nn.softmax(s, axis=-1)
        o = jnp.einsum('bhqk,bhkd->bhqd', attn_p, vh)
        o = o.transpose(0, 2, 1, 3).reshape(B * S, D)
        attn = o @ p["wo"] + p["bo"]

        h1 = x + attn
        mu = h1.mean(-1, keepdims=True)
        var = ((h1 - mu) ** 2).mean(-1, keepdims=True)
        h1 = (h1 - mu) / jnp.sqrt(var + LN_EPS) * p["g1"] + p["be1"]

        f = jnp.maximum(h1 @ p["w1"] + p["b1"], 0.0) @ p["w2"] + p["b2"]
        h2 = h1 + f
        mu = h2.mean(-1, keepdims=True)
        var = ((h2 - mu) ** 2).mean(-1, keepdims=True)
        h2 = (h2 - mu) / jnp.sqrt(var + LN_EPS) * p["g2"] + p["be2"]
        out = h2.reshape(B, S, D)
    return out


def init_layer_params(key):
    ks = jax.random.split(key, 6)
    scale = 0.02
    return {
        "wq": scale * jax.random.normal(ks[0], (D_MODEL, D_MODEL), jnp.float32),
        "bq": jnp.zeros((1, D_MODEL), jnp.float32),
        "wk": scale * jax.random.normal(ks[1], (D_MODEL, D_MODEL), jnp.float32),
        "bk": jnp.zeros((1, D_MODEL), jnp.float32),
        "wv": scale * jax.random.normal(ks[2], (D_MODEL, D_MODEL), jnp.float32),
        "bv": jnp.zeros((1, D_MODEL), jnp.float32),
        "wo": scale * jax.random.normal(ks[3], (D_MODEL, D_MODEL), jnp.float32),
        "bo": jnp.zeros((1, D_MODEL), jnp.float32),
        "g1": jnp.ones((1, D_MODEL), jnp.float32),
        "be1": jnp.zeros((1, D_MODEL), jnp.float32),
        "w1": scale * jax.random.normal(ks[4], (D_MODEL, D_FF), jnp.float32),
        "b1": jnp.zeros((1, D_FF), jnp.float32),
        "w2": scale * jax.random.normal(ks[5], (D_FF, D_MODEL), jnp.float32),
        "b2": jnp.zeros((1, D_MODEL), jnp.float32),
        "g2": jnp.ones((1, D_MODEL), jnp.float32),
        "be2": jnp.zeros((1, D_MODEL), jnp.float32),
    }


if __name__ == "__main__":
    root = jax.random.PRNGKey(0)
    k_x, k_p = jax.random.split(root)

    src = jax.random.normal(k_x, (BATCH, SEQ, D_MODEL), jnp.float32)

    # Padding-style mask: batch 0 attends everywhere, batch 1 masks the last
    # two key positions.  Shape (B, S, S); 1.0 = attend, 0.0 = masked.
    key_keep = jnp.ones((BATCH, SEQ), jnp.float32)
    key_keep = key_keep.at[1, -2:].set(0.0)
    src_mask = jnp.broadcast_to(key_keep[:, None, :], (BATCH, SEQ, SEQ))

    layer_keys = jax.random.split(k_p, N_LAYER)
    layer_params = [init_layer_params(k) for k in layer_keys]

    out = encoder_forward(src, src_mask, layer_params)
    out = jax.block_until_ready(out)

    assert out.shape == (BATCH, SEQ, D_MODEL)
    assert jnp.all(jnp.isfinite(out))

    # Loose correctness check against a plain-JAX reference (approx reciprocal
    # in the softmax denominator introduces a tiny, bounded deviation).
    ref = jax.block_until_ready(_reference_forward(src, src_mask, layer_params))
    assert jnp.max(jnp.abs(out - ref)) < 2e-2

    print("KERNEL_OK")
</pallas_src>

<mosaic_0001>
module attributes {stable_mosaic.version = 11 : i64} {
  func.func @_encoder_stack_kernel(%arg0: memref<16x32xf32, #tpu.memory_space<vmem>>, %arg1: memref<64x16xf32, #tpu.memory_space<vmem>>, %arg2: memref<64x32xf32, #tpu.memory_space<vmem>>, %arg3: memref<32x96xf32, #tpu.memory_space<vmem>>, %arg4: memref<1x96xf32, #tpu.memory_space<vmem>>, %arg5: memref<32x32xf32, #tpu.memory_space<vmem>>, %arg6: memref<1x32xf32, #tpu.memory_space<vmem>>, %arg7: memref<1x32xf32, #tpu.memory_space<vmem>>, %arg8: memref<1x32xf32, #tpu.memory_space<vmem>>, %arg9: memref<32x64xf32, #tpu.memory_space<vmem>>, %arg10: memref<1x64xf32, #tpu.memory_space<vmem>>, %arg11: memref<64x32xf32, #tpu.memory_space<vmem>>, %arg12: memref<1x32xf32, #tpu.memory_space<vmem>>, %arg13: memref<1x32xf32, #tpu.memory_space<vmem>>, %arg14: memref<1x32xf32, #tpu.memory_space<vmem>>, %arg15: memref<32x96xf32, #tpu.memory_space<vmem>>, %arg16: memref<1x96xf32, #tpu.memory_space<vmem>>, %arg17: memref<32x32xf32, #tpu.memory_space<vmem>>, %arg18: memref<1x32xf32, #tpu.memory_space<vmem>>, %arg19: memref<1x32xf32, #tpu.memory_space<vmem>>, %arg20: memref<1x32xf32, #tpu.memory_space<vmem>>, %arg21: memref<32x64xf32, #tpu.memory_space<vmem>>, %arg22: memref<1x64xf32, #tpu.memory_space<vmem>>, %arg23: memref<64x32xf32, #tpu.memory_space<vmem>>, %arg24: memref<1x32xf32, #tpu.memory_space<vmem>>, %arg25: memref<1x32xf32, #tpu.memory_space<vmem>>, %arg26: memref<1x32xf32, #tpu.memory_space<vmem>>, %arg27: memref<16x32xf32, #tpu.memory_space<vmem>>) attributes {dimension_semantics = [], scalar_prefetch = 0 : i64, scratch_operands = 0 : i64, tpu.core_type = #tpu.core_type<tc>} {
    %c0 = arith.constant 0 : index
    %c0_0 = arith.constant 0 : index
    %0 = vector.load %arg0[%c0, %c0_0] : memref<16x32xf32, #tpu.memory_space<vmem>>, vector<16x32xf32>
    %c0_1 = arith.constant 0 : index
    %c0_2 = arith.constant 0 : index
    %1 = vector.load %arg1[%c0_1, %c0_2] : memref<64x16xf32, #tpu.memory_space<vmem>>, vector<64x16xf32>
    %c0_3 = arith.constant 0 : index
    %c0_4 = arith.constant 0 : index
    %2 = vector.load %arg2[%c0_3, %c0_4] : memref<64x32xf32, #tpu.memory_space<vmem>>, vector<64x32xf32>
    %c0_5 = arith.constant 0 : index
    %c0_6 = arith.constant 0 : index
    %3 = vector.load %arg3[%c0_5, %c0_6] : memref<32x96xf32, #tpu.memory_space<vmem>>, vector<32x96xf32>
    %c0_7 = arith.constant 0 : index
    %c0_8 = arith.constant 0 : index
    %4 = vector.load %arg4[%c0_7, %c0_8] : memref<1x96xf32, #tpu.memory_space<vmem>>, vector<1x96xf32>
    %c0_9 = arith.constant 0 : index
    %c0_10 = arith.constant 0 : index
    %5 = vector.load %arg5[%c0_9, %c0_10] : memref<32x32xf32, #tpu.memory_space<vmem>>, vector<32x32xf32>
    %c0_11 = arith.constant 0 : index
    %c0_12 = arith.constant 0 : index
    %6 = vector.load %arg6[%c0_11, %c0_12] : memref<1x32xf32, #tpu.memory_space<vmem>>, vector<1x32xf32>
    %c0_13 = arith.constant 0 : index
    %c0_14 = arith.constant 0 : index
    %7 = vector.load %arg7[%c0_13, %c0_14] : memref<1x32xf32, #tpu.memory_space<vmem>>, vector<1x32xf32>
    %c0_15 = arith.constant 0 : index
    %c0_16 = arith.constant 0 : index
    %8 = vector.load %arg8[%c0_15, %c0_16] : memref<1x32xf32, #tpu.memory_space<vmem>>, vector<1x32xf32>
    %c0_17 = arith.constant 0 : index
    %c0_18 = arith.constant 0 : index
    %9 = vector.load %arg9[%c0_17, %c0_18] : memref<32x64xf32, #tpu.memory_space<vmem>>, vector<32x64xf32>
    %c0_19 = arith.constant 0 : index
    %c0_20 = arith.constant 0 : index
    %10 = vector.load %arg10[%c0_19, %c0_20] : memref<1x64xf32, #tpu.memory_space<vmem>>, vector<1x64xf32>
    %c0_21 = arith.constant 0 : index
    %c0_22 = arith.constant 0 : index
    %11 = vector.load %arg11[%c0_21, %c0_22] : memref<64x32xf32, #tpu.memory_space<vmem>>, vector<64x32xf32>
    %c0_23 = arith.constant 0 : index
    %c0_24 = arith.constant 0 : index
    %12 = vector.load %arg12[%c0_23, %c0_24] : memref<1x32xf32, #tpu.memory_space<vmem>>, vector<1x32xf32>
    %c0_25 = arith.constant 0 : index
    %c0_26 = arith.constant 0 : index
    %13 = vector.load %arg13[%c0_25, %c0_26] : memref<1x32xf32, #tpu.memory_space<vmem>>, vector<1x32xf32>
    %c0_27 = arith.constant 0 : index
    %c0_28 = arith.constant 0 : index
    %14 = vector.load %arg14[%c0_27, %c0_28] : memref<1x32xf32, #tpu.memory_space<vmem>>, vector<1x32xf32>
    %cst = arith.constant dense<0.000000e+00> : vector<16x96xf32>
    %15 = tpu.matmul %0, %3, %cst {dimension_numbers = #tpu.dot_dimension_numbers<[1], [0], [0], [1], [0, 0, 1, 1], [], []>} : vector<16x32xf32>, vector<32x96xf32>, vector<16x96xf32> -> vector<16x96xf32>
    %16 = vector.broadcast %4 : vector<1x96xf32> to vector<16x96xf32>
    %17 = arith.addf %15, %16 : vector<16x96xf32>
    %18 = vector.extract_strided_slice %17 {offsets = [0, 0], sizes = [16, 32], strides = [1, 1]} : vector<16x96xf32> to vector<16x32xf32>
    %19 = vector.extract_strided_slice %17 {offsets = [0, 32], sizes = [16, 32], strides = [1, 1]} : vector<16x96xf32> to vector<16x32xf32>
    %20 = tpu.transpose %19, [1, 0] : vector<16x32xf32> -> vector<32x16xf32>
    %21 = vector.extract_strided_slice %17 {offsets = [0, 64], sizes = [16, 32], strides = [1, 1]} : vector<16x96xf32> to vector<16x32xf32>
    %22 = tpu.transpose %21, [1, 0] : vector<16x32xf32> -> vector<32x16xf32>
    %23 = vector.shape_cast %22 : vector<32x16xf32> to vector<4x8x16xf32>
    %24 = tpu.concatenate %18, %18, %18, %18 in 0 : vector<16x32xf32>, vector<16x32xf32>, vector<16x32xf32>, vector<16x32xf32> -> vector<64x32xf32>
    %25 = arith.mulf %24, %2 : vector<64x32xf32>
    %cst_29 = arith.constant dense<0.000000e+00> : vector<64x16xf32>
    %26 = tpu.matmul %25, %20, %cst_29 {dimension_numbers = #tpu.dot_dimension_numbers<[1], [0], [0], [1], [0, 0, 1, 1], [], []>} : vector<64x32xf32>, vector<32x16xf32>, vector<64x16xf32> -> vector<64x16xf32>
    %27 = arith.addf %26, %1 : vector<64x16xf32>
    %cst_30 = arith.constant dense<0xFF800000> : vector<64xf32>
    %28 = vector.multi_reduction <maximumf>, %27, %cst_30 [1] : vector<64x16xf32> to vector<64xf32>
    %29 = vector.shape_cast %28 : vector<64xf32> to vector<64x1xf32>
    %30 = vector.broadcast %29 : vector<64x1xf32> to vector<64x16xf32>
    %31 = arith.subf %27, %30 : vector<64x16xf32>
    %32 = math.exp %31 : vector<64x16xf32>
    %cst_31 = arith.constant dense<0.000000e+00> : vector<64xf32>
    %33 = vector.multi_reduction <add>, %32, %cst_31 [1] : vector<64x16xf32> to vector<64xf32>
    %34 = vector.shape_cast %33 : vector<64xf32> to vector<64x1xf32>
    %35 = tpu.reciprocal %34 {approx = true} : vector<64x1xf32> -> vector<64x1xf32>
    %36 = vector.broadcast %35 : vector<64x1xf32> to vector<64x16xf32>
    %37 = arith.mulf %32, %36 : vector<64x16xf32>
    %38 = vector.shape_cast %37 : vector<64x16xf32> to vector<4x16x16xf32>
    "tpu.trace_start"() <{level = 10 : i32, message = "hdk,hqk->hdq"}> : () -> ()
    %cst_32 = arith.constant dense<0.000000e+00> : vector<4x8x16xf32>
    %39 = tpu.matmul %23, %38, %cst_32 {dimension_numbers = #tpu.dot_dimension_numbers<[2], [2], [1], [1], [0, 0, 0, 1, 1, 1], [0], [0]>} : vector<4x8x16xf32>, vector<4x16x16xf32>, vector<4x8x16xf32> -> vector<4x8x16xf32>
    "tpu.trace_stop"() : () -> ()
    %40 = vector.shape_cast %39 : vector<4x8x16xf32> to vector<32x16xf32>
    %41 = tpu.transpose %40, [1, 0] : vector<32x16xf32> -> vector<16x32xf32>
    %cst_33 = arith.constant dense<0.000000e+00> : vector<16x32xf32>
    %42 = tpu.matmul %41, %5, %cst_33 {dimension_numbers = #tpu.dot_dimension_numbers<[1], [0], [0], [1], [0, 0, 1, 1], [], []>} : vector<16x32xf32>, vector<32x32xf32>, vector<16x32xf32> -> vector<16x32xf32>
    %43 = vector.broadcast %6 : vector<1x32xf32> to vector<16x32xf32>
    %44 = arith.addf %42, %43 : vector<16x32xf32>
    %45 = arith.addf %0, %44 : vector<16x32xf32>
    %cst_34 = arith.constant dense<0.000000e+00> : vector<16xf32>
    %46 = vector.multi_reduction <add>, %45, %cst_34 [1] : vector<16x32xf32> to vector<16xf32>
    %47 = vector.shape_cast %46 : vector<16xf32> to vector<16x1xf32>
    %cst_35 = arith.constant 3.200000e+01 : f32
    %48 = vector.broadcast %cst_35 : f32 to vector<16x1xf32>
    %49 = arith.divf %47, %48 : vector<16x1xf32>
    %50 = arith.mulf %45, %45 : vector<16x32xf32>
    %cst_36 = arith.constant dense<0.000000e+00> : vector<16xf32>
    %51 = vector.multi_reduction <add>, %50, %cst_36 [1] : vector<16x32xf32> to vector<16xf32>
    %52 = vector.shape_cast %51 : vector<16xf32> to vector<16x1xf32>
    %cst_37 = arith.constant 3.200000e+01 : f32
    %53 = vector.broadcast %cst_37 : f32 to vector<16x1xf32>
    %54 = arith.divf %52, %53 : vector<16x1xf32>
    %55 = arith.mulf %49, %49 : vector<16x1xf32>
    %56 = arith.subf %54, %55 : vector<16x1xf32>
    %57 = vector.broadcast %49 : vector<16x1xf32> to vector<16x32xf32>
    %58 = arith.subf %45, %57 : vector<16x32xf32>
    %cst_38 = arith.constant 9.99999974E-6 : f32
    %59 = vector.broadcast %cst_38 : f32 to vector<16x1xf32>
    %60 = arith.addf %56, %59 : vector<16x1xf32>
    %61 = math.rsqrt %60 : vector<16x1xf32>
    %62 = vector.broadcast %61 : vector<16x1xf32> to vector<16x32xf32>
    %63 = arith.mulf %58, %62 : vector<16x32xf32>
    %64 = vector.broadcast %7 : vector<1x32xf32> to vector<16x32xf32>
    %65 = arith.mulf %63, %64 : vector<16x32xf32>
    %66 = vector.broadcast %8 : vector<1x32xf32> to vector<16x32xf32>
    %67 = arith.addf %65, %66 : vector<16x32xf32>
    %cst_39 = arith.constant dense<0.000000e+00> : vector<16x64xf32>
    %68 = tpu.matmul %67, %9, %cst_39 {dimension_numbers = #tpu.dot_dimension_numbers<[1], [0], [0], [1], [0, 0, 1, 1], [], []>} : vector<16x32xf32>, vector<32x64xf32>, vector<16x64xf32> -> vector<16x64xf32>
    %69 = vector.broadcast %10 : vector<1x64xf32> to vector<16x64xf32>
    %70 = arith.addf %68, %69 : vector<16x64xf32>
    %cst_40 = arith.constant 0.000000e+00 : f32
    %71 = vector.broadcast %cst_40 : f32 to vector<16x64xf32>
    %72 = arith.maximumf %70, %71 : vector<16x64xf32>
    %cst_41 = arith.constant dense<0.000000e+00> : vector<16x32xf32>
    %73 = tpu.matmul %72, %11, %cst_41 {dimension_numbers = #tpu.dot_dimension_numbers<[1], [0], [0], [1], [0, 0, 1, 1], [], []>} : vector<16x64xf32>, vector<64x32xf32>, vector<16x32xf32> -> vector<16x32xf32>
    %74 = vector.broadcast %12 : vector<1x32xf32> to vector<16x32xf32>
    %75 = arith.addf %73, %74 : vector<16x32xf32>
    %76 = arith.addf %67, %75 : vector<16x32xf32>
    %cst_42 = arith.constant dense<0.000000e+00> : vector<16xf32>
    %77 = vector.multi_reduction <add>, %76, %cst_42 [1] : vector<16x32xf32> to vector<16xf32>
    %78 = vector.shape_cast %77 : vector<16xf32> to vector<16x1xf32>
    %cst_43 = arith.constant 3.200000e+01 : f32
    %79 = vector.broadcast %cst_43 : f32 to vector<16x1xf32>
    %80 = arith.divf %78, %79 : vector<16x1xf32>
    %81 = arith.mulf %76, %76 : vector<16x32xf32>
    %cst_44 = arith.constant dense<0.000000e+00> : vector<16xf32>
    %82 = vector.multi_reduction <add>, %81, %cst_44 [1] : vector<16x32xf32> to vector<16xf32>
    %83 = vector.shape_cast %82 : vector<16xf32> to vector<16x1xf32>
    %cst_45 = arith.constant 3.200000e+01 : f32
    %84 = vector.broadcast %cst_45 : f32 to vector<16x1xf32>
    %85 = arith.divf %83, %84 : vector<16x1xf32>
    %86 = arith.mulf %80, %80 : vector<16x1xf32>
    %87 = arith.subf %85, %86 : vector<16x1xf32>
    %88 = vector.broadcast %80 : vector<16x1xf32> to vector<16x32xf32>
    %89 = arith.subf %76, %88 : vector<16x32xf32>
    %cst_46 = arith.constant 9.99999974E-6 : f32
    %90 = vector.broadcast %cst_46 : f32 to vector<16x1xf32>
    %91 = arith.addf %87, %90 : vector<16x1xf32>
    %92 = math.rsqrt %91 : vector<16x1xf32>
    %93 = vector.broadcast %92 : vector<16x1xf32> to vector<16x32xf32>
    %94 = arith.mulf %89, %93 : vector<16x32xf32>
    %95 = vector.broadcast %13 : vector<1x32xf32> to vector<16x32xf32>
    %96 = arith.mulf %94, %95 : vector<16x32xf32>
    %97 = vector.broadcast %14 : vector<1x32xf32> to vector<16x32xf32>
    %98 = arith.addf %96, %97 : vector<16x32xf32>
    %c0_47 = arith.constant 0 : index
    %c0_48 = arith.constant 0 : index
    %99 = vector.load %arg15[%c0_47, %c0_48] : memref<32x96xf32, #tpu.memory_space<vmem>>, vector<32x96xf32>
    %c0_49 = arith.constant 0 : index
    %c0_50 = arith.constant 0 : index
    %100 = vector.load %arg16[%c0_49, %c0_50] : memref<1x96xf32, #tpu.memory_space<vmem>>, vector<1x96xf32>
    %c0_51 = arith.constant 0 : index
    %c0_52 = arith.constant 0 : index
    %101 = vector.load %arg17[%c0_51, %c0_52] : memref<32x32xf32, #tpu.memory_space<vmem>>, vector<32x32xf32>
    %c0_53 = arith.constant 0 : index
    %c0_54 = arith.constant 0 : index
    %102 = vector.load %arg18[%c0_53, %c0_54] : memref<1x32xf32, #tpu.memory_space<vmem>>, vector<1x32xf32>
    %c0_55 = arith.constant 0 : index
    %c0_56 = arith.constant 0 : index
    %103 = vector.load %arg19[%c0_55, %c0_56] : memref<1x32xf32, #tpu.memory_space<vmem>>, vector<1x32xf32>
    %c0_57 = arith.constant 0 : index
    %c0_58 = arith.constant 0 : index
    %104 = vector.load %arg20[%c0_57, %c0_58] : memref<1x32xf32, #tpu.memory_space<vmem>>, vector<1x32xf32>
    %c0_59 = arith.constant 0 : index
    %c0_60 = arith.constant 0 : index
    %105 = vector.load %arg21[%c0_59, %c0_60] : memref<32x64xf32, #tpu.memory_space<vmem>>, vector<32x64xf32>
    %c0_61 = arith.constant 0 : index
    %c0_62 = arith.constant 0 : index
    %106 = vector.load %arg22[%c0_61, %c0_62] : memref<1x64xf32, #tpu.memory_space<vmem>>, vector<1x64xf32>
    %c0_63 = arith.constant 0 : index
    %c0_64 = arith.constant 0 : index
    %107 = vector.load %arg23[%c0_63, %c0_64] : memref<64x32xf32, #tpu.memory_space<vmem>>, vector<64x32xf32>
    %c0_65 = arith.constant 0 : index
    %c0_66 = arith.constant 0 : index
    %108 = vector.load %arg24[%c0_65, %c0_66] : memref<1x32xf32, #tpu.memory_space<vmem>>, vector<1x32xf32>
    %c0_67 = arith.constant 0 : index
    %c0_68 = arith.constant 0 : index
    %109 = vector.load %arg25[%c0_67, %c0_68] : memref<1x32xf32, #tpu.memory_space<vmem>>, vector<1x32xf32>
    %c0_69 = arith.constant 0 : index
    %c0_70 = arith.constant 0 : index
    %110 = vector.load %arg26[%c0_69, %c0_70] : memref<1x32xf32, #tpu.memory_space<vmem>>, vector<1x32xf32>
    %cst_71 = arith.constant dense<0.000000e+00> : vector<16x96xf32>
    %111 = tpu.matmul %98, %99, %cst_71 {dimension_numbers = #tpu.dot_dimension_numbers<[1], [0], [0], [1], [0, 0, 1, 1], [], []>} : vector<16x32xf32>, vector<32x96xf32>, vector<16x96xf32> -> vector<16x96xf32>
    %112 = vector.broadcast %100 : vector<1x96xf32> to vector<16x96xf32>
    %113 = arith.addf %111, %112 : vector<16x96xf32>
    %114 = vector.extract_strided_slice %113 {offsets = [0, 0], sizes = [16, 32], strides = [1, 1]} : vector<16x96xf32> to vector<16x32xf32>
    %115 = vector.extract_strided_slice %113 {offsets = [0, 32], sizes = [16, 32], strides = [1, 1]} : vector<16x96xf32> to vector<16x32xf32>
    %116 = tpu.transpose %115, [1, 0] : vector<16x32xf32> -> vector<32x16xf32>
    %117 = vector.extract_strided_slice %113 {offsets = [0, 64], sizes = [16, 32], strides = [1, 1]} : vector<16x96xf32> to vector<16x32xf32>
    %118 = tpu.transpose %117, [1, 0] : vector<16x32xf32> -> vector<32x16xf32>
    %119 = vector.shape_cast %118 : vector<32x16xf32> to vector<4x8x16xf32>
    %120 = tpu.concatenate %114, %114, %114, %114 in 0 : vector<16x32xf32>, vector<16x32xf32>, vector<16x32xf32>, vector<16x32xf32> -> vector<64x32xf32>
    %121 = arith.mulf %120, %2 : vector<64x32xf32>
    %cst_72 = arith.constant dense<0.000000e+00> : vector<64x16xf32>
    %122 = tpu.matmul %121, %116, %cst_72 {dimension_numbers = #tpu.dot_dimension_numbers<[1], [0], [0], [1], [0, 0, 1, 1], [], []>} : vector<64x32xf32>, vector<32x16xf32>, vector<64x16xf32> -> vector<64x16xf32>
    %123 = arith.addf %122, %1 : vector<64x16xf32>
    %cst_73 = arith.constant dense<0xFF800000> : vector<64xf32>
    %124 = vector.multi_reduction <maximumf>, %123, %cst_73 [1] : vector<64x16xf32> to vector<64xf32>
    %125 = vector.shape_cast %124 : vector<64xf32> to vector<64x1xf32>
    %126 = vector.broadcast %125 : vector<64x1xf32> to vector<64x16xf32>
    %127 = arith.subf %123, %126 : vector<64x16xf32>
    %128 = math.exp %127 : vector<64x16xf32>
    %cst_74 = arith.constant dense<0.000000e+00> : vector<64xf32>
    %129 = vector.multi_reduction <add>, %128, %cst_74 [1] : vector<64x16xf32> to vector<64xf32>
    %130 = vector.shape_cast %129 : vector<64xf32> to vector<64x1xf32>
    %131 = tpu.reciprocal %130 {approx = true} : vector<64x1xf32> -> vector<64x1xf32>
    %132 = vector.broadcast %131 : vector<64x1xf32> to vector<64x16xf32>
    %133 = arith.mulf %128, %132 : vector<64x16xf32>
    %134 = vector.shape_cast %133 : vector<64x16xf32> to vector<4x16x16xf32>
    "tpu.trace_start"() <{level = 10 : i32, message = "hdk,hqk->hdq"}> : () -> ()
    %cst_75 = arith.constant dense<0.000000e+00> : vector<4x8x16xf32>
    %135 = tpu.matmul %119, %134, %cst_75 {dimension_numbers = #tpu.dot_dimension_numbers<[2], [2], [1], [1], [0, 0, 0, 1, 1, 1], [0], [0]>} : vector<4x8x16xf32>, vector<4x16x16xf32>, vector<4x8x16xf32> -> vector<4x8x16xf32>
    "tpu.trace_stop"() : () -> ()
    %136 = vector.shape_cast %135 : vector<4x8x16xf32> to vector<32x16xf32>
    %137 = tpu.transpose %136, [1, 0] : vector<32x16xf32> -> vector<16x32xf32>
    %cst_76 = arith.constant dense<0.000000e+00> : vector<16x32xf32>
    %138 = tpu.matmul %137, %101, %cst_76 {dimension_numbers = #tpu.dot_dimension_numbers<[1], [0], [0], [1], [0, 0, 1, 1], [], []>} : vector<16x32xf32>, vector<32x32xf32>, vector<16x32xf32> -> vector<16x32xf32>
    %139 = vector.broadcast %102 : vector<1x32xf32> to vector<16x32xf32>
    %140 = arith.addf %138, %139 : vector<16x32xf32>
    %141 = arith.addf %98, %140 : vector<16x32xf32>
    %cst_77 = arith.constant dense<0.000000e+00> : vector<16xf32>
    %142 = vector.multi_reduction <add>, %141, %cst_77 [1] : vector<16x32xf32> to vector<16xf32>
    %143 = vector.shape_cast %142 : vector<16xf32> to vector<16x1xf32>
    %cst_78 = arith.constant 3.200000e+01 : f32
    %144 = vector.broadcast %cst_78 : f32 to vector<16x1xf32>
    %145 = arith.divf %143, %144 : vector<16x1xf32>
    %146 = arith.mulf %141, %141 : vector<16x32xf32>
    %cst_79 = arith.constant dense<0.000000e+00> : vector<16xf32>
    %147 = vector.multi_reduction <add>, %146, %cst_79 [1] : vector<16x32xf32> to vector<16xf32>
    %148 = vector.shape_cast %147 : vector<16xf32> to vector<16x1xf32>
    %cst_80 = arith.constant 3.200000e+01 : f32
    %149 = vector.broadcast %cst_80 : f32 to vector<16x1xf32>
    %150 = arith.divf %148, %149 : vector<16x1xf32>
    %151 = arith.mulf %145, %145 : vector<16x1xf32>
    %152 = arith.subf %150, %151 : vector<16x1xf32>
    %153 = vector.broadcast %145 : vector<16x1xf32> to vector<16x32xf32>
    %154 = arith.subf %141, %153 : vector<16x32xf32>
    %cst_81 = arith.constant 9.99999974E-6 : f32
    %155 = vector.broadcast %cst_81 : f32 to vector<16x1xf32>
    %156 = arith.addf %152, %155 : vector<16x1xf32>
    %157 = math.rsqrt %156 : vector<16x1xf32>
    %158 = vector.broadcast %157 : vector<16x1xf32> to vector<16x32xf32>
    %159 = arith.mulf %154, %158 : vector<16x32xf32>
    %160 = vector.broadcast %103 : vector<1x32xf32> to vector<16x32xf32>
    %161 = arith.mulf %159, %160 : vector<16x32xf32>
    %162 = vector.broadcast %104 : vector<1x32xf32> to vector<16x32xf32>
    %163 = arith.addf %161, %162 : vector<16x32xf32>
    %cst_82 = arith.constant dense<0.000000e+00> : vector<16x64xf32>
    %164 = tpu.matmul %163, %105, %cst_82 {dimension_numbers = #tpu.dot_dimension_numbers<[1], [0], [0], [1], [0, 0, 1, 1], [], []>} : vector<16x32xf32>, vector<32x64xf32>, vector<16x64xf32> -> vector<16x64xf32>
    %165 = vector.broadcast %106 : vector<1x64xf32> to vector<16x64xf32>
    %166 = arith.addf %164, %165 : vector<16x64xf32>
    %cst_83 = arith.constant 0.000000e+00 : f32
    %167 = vector.broadcast %cst_83 : f32 to vector<16x64xf32>
    %168 = arith.maximumf %166, %167 : vector<16x64xf32>
    %cst_84 = arith.constant dense<0.000000e+00> : vector<16x32xf32>
    %169 = tpu.matmul %168, %107, %cst_84 {dimension_numbers = #tpu.dot_dimension_numbers<[1], [0], [0], [1], [0, 0, 1, 1], [], []>} : vector<16x64xf32>, vector<64x32xf32>, vector<16x32xf32> -> vector<16x32xf32>
    %170 = vector.broadcast %108 : vector<1x32xf32> to vector<16x32xf32>
    %171 = arith.addf %169, %170 : vector<16x32xf32>
    %172 = arith.addf %163, %171 : vector<16x32xf32>
    %cst_85 = arith.constant dense<0.000000e+00> : vector<16xf32>
    %173 = vector.multi_reduction <add>, %172, %cst_85 [1] : vector<16x32xf32> to vector<16xf32>
    %174 = vector.shape_cast %173 : vector<16xf32> to vector<16x1xf32>
    %cst_86 = arith.constant 3.200000e+01 : f32
    %175 = vector.broadcast %cst_86 : f32 to vector<16x1xf32>
    %176 = arith.divf %174, %175 : vector<16x1xf32>
    %177 = arith.mulf %172, %172 : vector<16x32xf32>
    %cst_87 = arith.constant dense<0.000000e+00> : vector<16xf32>
    %178 = vector.multi_reduction <add>, %177, %cst_87 [1] : vector<16x32xf32> to vector<16xf32>
    %179 = vector.shape_cast %178 : vector<16xf32> to vector<16x1xf32>
    %cst_88 = arith.constant 3.200000e+01 : f32
    %180 = vector.broadcast %cst_88 : f32 to vector<16x1xf32>
    %181 = arith.divf %179, %180 : vector<16x1xf32>
    %182 = arith.mulf %176, %176 : vector<16x1xf32>
    %183 = arith.subf %181, %182 : vector<16x1xf32>
    %184 = vector.broadcast %176 : vector<16x1xf32> to vector<16x32xf32>
    %185 = arith.subf %172, %184 : vector<16x32xf32>
    %cst_89 = arith.constant 9.99999974E-6 : f32
    %186 = vector.broadcast %cst_89 : f32 to vector<16x1xf32>
    %187 = arith.addf %183, %186 : vector<16x1xf32>
    %188 = math.rsqrt %187 : vector<16x1xf32>
    %189 = vector.broadcast %188 : vector<16x1xf32> to vector<16x32xf32>
    %190 = arith.mulf %185, %189 : vector<16x32xf32>
    %191 = vector.broadcast %109 : vector<1x32xf32> to vector<16x32xf32>
    %192 = arith.mulf %190, %191 : vector<16x32xf32>
    %193 = vector.broadcast %110 : vector<1x32xf32> to vector<16x32xf32>
    %194 = arith.addf %192, %193 : vector<16x32xf32>
    %c0_90 = arith.constant 0 : index
    %c0_91 = arith.constant 0 : index
    %195 = vector.load %arg27[%c0_90, %c0_91] : memref<16x32xf32, #tpu.memory_space<vmem>>, vector<16x32xf32>
    tpu.vector_store %arg27[%c0_90, %c0_91], %194 {strides = array<i32>} : memref<16x32xf32, #tpu.memory_space<vmem>>, vector<16x32xf32>,
    return
  }
}

</mosaic_0001>

<bundles_post_ra>
// kernel: encoder_forward.1
= control target key start
LH: loop header
LB: loop body
LE: loop exit
PB: predicated region body
PF: predicated region fallthrough
CT: control target
= control target key end

     0   :  { %s3428_s0 = inlined_call_operand.vmem [shape: f32[16,32], index: 0, kind: input, shape index: {}]   ;;  %s3429_s1 = inlined_call_operand.vmem [shape: f32[64,16], index: 1, kind: input, shape index: {}]   ;;  %s3430_s2 = inlined_call_operand.vmem [shape: f32[64,32], index: 2, kind: input, shape index: {}]   ;;  %s3431_s3 = inlined_call_operand.vmem [shape: f32[32,96], index: 3, kind: input, shape index: {}]   ;;  %s3432_s4 = inlined_call_operand.vmem [shape: f32[1,96], index: 4, kind: input, shape index: {}]   ;;  %s3433_s5 = inlined_call_operand.vmem [shape: f32[32,32], index: 5, kind: input, shape index: {}]   ;;  %s3434_s6 = inlined_call_operand.vmem [shape: f32[1,32], index: 6, kind: input, shape index: {}]   ;;  %s3435_s7 = inlined_call_operand.vmem [shape: f32[1,32], index: 7, kind: input, shape index: {}]   ;;  %s3436_s8 = inlined_call_operand.vmem [shape: f32[1,32], index: 8, kind: input, shape index: {}]   ;;  %s3437_s9 = inlined_call_operand.vmem [shape: f32[32,64], index: 9, kind: input, shape index: {}]   ;;  %s3438_s10 = inlined_call_operand.vmem [shape: f32[1,64], index: 10, kind: input, shape index: {}]   ;;  %s3439_s11 = inlined_call_operand.vmem [shape: f32[64,32], index: 11, kind: input, shape index: {}]   ;;  %s3440_s12 = inlined_call_operand.vmem [shape: f32[1,32], index: 12, kind: input, shape index: {}]   ;;  %s3441_s13 = inlined_call_operand.vmem [shape: f32[1,32], index: 13, kind: input, shape index: {}]   ;;  %s3442_s14 = inlined_call_operand.vmem [shape: f32[1,32], index: 14, kind: input, shape index: {}]   ;;  %s3443_s15 = inlined_call_operand.vmem [shape: f32[32,96], index: 15, kind: input, shape index: {}]   ;;  %s3444_s16 = inlined_call_operand.vmem [shape: f32[1,96], index: 16, kind: input, shape index: {}]   ;;  %s3445_s17 = inlined_call_operand.vmem [shape: f32[32,32], index: 17, kind: input, shape index: {}]   ;;  %s3446_s18 = inlined_call_operand.vmem [shape: f32[1,32], index: 18, kind: input, shape index: {}]   ;;  %s3447_s19 = inlined_call_operand.vmem [shape: f32[1,32], index: 19, kind: input, shape index: {}]   ;;  %s3448_s20 = inlined_call_operand.vmem [shape: f32[1,32], index: 20, kind: input, shape index: {}]   ;;  %s3449_s21 = inlined_call_operand.vmem [shape: f32[32,64], index: 21, kind: input, shape index: {}]   ;;  %s3450_s22 = inlined_call_operand.vmem [shape: f32[1,64], index: 22, kind: input, shape index: {}]   ;;  %s3451_s23 = inlined_call_operand.vmem [shape: f32[64,32], index: 23, kind: input, shape index: {}]   ;;  %s3452_s24 = inlined_call_operand.vmem [shape: f32[1,32], index: 24, kind: input, shape index: {}]   ;;  %s3453_s25 = inlined_call_operand.vmem [shape: f32[1,32], index: 25, kind: input, shape index: {}]   ;;  %s3454_s26 = inlined_call_operand.vmem [shape: f32[1,32], index: 26, kind: input, shape index: {}]   ;;  %s3455_s27 = inlined_call_operand.hbm [shape: f32[16,32], index: 27, kind: output, shape index: {}]  }
   0x1   :  { %3463 = sst [smem:[#allocation5_spill]] %s3428_s0 }
   0x2   :  { %3464 = sst [smem:[#allocation6_spill]] %s3429_s1 }
   0x3   :  { %3465 = sst [smem:[#allocation7_spill]] %s3430_s2 }
   0x4   :  { %3466 = sst [smem:[#allocation8_spill]] %s3431_s3 }
   0x5   :  { %3467 = sst [smem:[#allocation9_spill]] %s3432_s4 }
   0x6   :  { %3468 = sst [smem:[#allocation10_spill]] %s3433_s5 }
   0x7   :  { %3469 = sst [smem:[#allocation11_spill]] %s3434_s6 }
   0x8   :  { %3470 = sst [smem:[#allocation12_spill]] %s3435_s7 }
   0x9   :  { %3471 = sst [smem:[#allocation13_spill]] %s3436_s8 }
   0xa   :  { %3472 = sst [smem:[#allocation14_spill]] %s3437_s9 }
   0xb   :  { %3473 = sst [smem:[#allocation15_spill]] %s3438_s10 }
   0xc   :  { %3474 = sst [smem:[#allocation16_spill]] %s3439_s11 }
   0xd   :  { %s3475_s8 = sld [smem:[#allocation8_spill]]  ;;  %vm139_vm0 = vcmask 261120  }
   0xe   :  { %s3476_s0 = sld [smem:[#allocation5_spill]] }
  0x13   :  { %v108_v0 = vld [vmem:[%s3475_s8 + $0x18] sm:$0xff]  ;;  %v107_v1 = vld [vmem:[%s3475_s8 + $0x10] sm:$0xff]  ;;  %v106_v3 = vld [vmem:[%s3475_s8 + $0x8] sm:$0xff] }
  0x14   :  { %2493 = vmatprep.subr.mxu1 %v108_v0  ;;  %v2950_v2 = vld [vmem:[%s3476_s0] sm:$0xff] }
  0x15   :  { %2494 = vmatpush3.msra.mxu1 %v108_v0  ;;  %2501 = vmatprep.mubr.msk.f32.mxu1 %vm139_vm0, %v2950_v2 }
  0x16   :  { %32 = vsyncpa [#allocation3], 0  ;;  %2495 = vmatprep.subr.mxu1 %v107_v1  ;;  %v105_v4 = vld [vmem:[%s3475_s8] sm:$0xff]  ;;  %v2963_v5 = vld [vmem:[%s3476_s0 + $0x8] sm:$0xff]  ;;  %s3477_s4 = sld [smem:[#allocation9_spill]]  ;;  %s2794_s5 = smov 96  }
  0x17   :  { %2496 = vmatpush3.msra.mxu1 %v107_v1  ;;  %s3478_s9 = sld [smem:[#allocation7_spill]]  ;;  %vm406_vm1 = vcmask 130048   ;;  %s2795_s6 = smov 64   ;;  %vm2797_vm2 = vmmov 0   ;;  %vm1074_vm3 = vcmask 523264  }
  0x18   :  { %2497 = vmatprep.subr.mxu1 %v106_v3  ;;  %s3479_s29 = sld [smem:[#allocation6_spill]] }
  0x19   :  { %2498 = vmatpush3.msra.mxu1 %v106_v3  ;;  %s3480_s11 = sld [smem:[#allocation10_spill]] }
  0x1a   :  { %2499 = vmatprep.subr.mxu1 %v105_v4  ;;  %s3481_s10 = sld [smem:[#allocation11_spill]] }
  0x1b   :  { %2500 = vmatpush3.msra.mxu1 %v105_v4  ;;  %s3483_s0 = sld [smem:[#allocation16_spill]] }
  0x1c   :  { %2502 = vmatmul.mubr.msk.f32.vlgmr.msra.gmra.mxu1 %vm139_vm0, %v2963_v5  ;;  %v2317_v6 = vld [vmem:[%s3477_s4] ss:$0 sm:$0xff]  ;;  %s3484_s4 = sld [smem:[#allocation12_spill]] }
  0x1d   :  { %v2975_v10 = vld [vmem:[%s3478_s9] sm:$0xff]  ;;  %v2991_v15 = vld [vmem:[%s3478_s9 + $0x8] sm:$0xff]  ;;  %v2997_v16 = vld [vmem:[%s3478_s9 + $0x10] sm:$0xff]  ;;  %s3485_s28 = sld [smem:[#allocation13_spill]] }
  0x1e   :  { %v3007_v19 = vld [vmem:[%s3478_s9 + $0x18] sm:$0xff]  ;;  %v3013_v20 = vld [vmem:[%s3478_s9 + $0x20] sm:$0xff]  ;;  %v3023_v23 = vld [vmem:[%s3478_s9 + $0x28] sm:$0xff]  ;;  %s3486_s30 = sld [smem:[#allocation15_spill]] }
  0x1f   :  { %v3029_v24 = vld [vmem:[%s3478_s9 + $0x30] sm:$0xff]  ;;  %v3039_v27 = vld [vmem:[%s3478_s9 + $0x38] sm:$0xff]  ;;  %v3049_v29 = vld [vmem:[%s3479_s29 + $0x8] sm:$0xff]  ;;  %s3482_s9 = sld [smem:[#allocation14_spill]] }
  0x20   :  { %v3054_v31 = vld [vmem:[%s3479_s29] sm:$0xff]  ;;  %v3060_v34 = vld [vmem:[%s3479_s29 + $0x18] sm:$0xff]  ;;  %v3067_v38 = vld [vmem:[%s3479_s29 + $0x10] sm:$0xff] }
  0x21   :  { %v3076_v44 = vld [vmem:[%s3479_s29 + $0x28] sm:$0xff]  ;;  %v3083_v49 = vld [vmem:[%s3479_s29 + $0x20] sm:$0xff]  ;;  %v3090_v52 = vld [vmem:[%s3479_s29 + $0x38] sm:$0xff] }
  0x22   :  { %v3097_v57 = vld [vmem:[%s3479_s29 + $0x30] sm:$0xff] }
  0xdc   :  { %v2503_v7 = vpop.f32.mrf.mxu1 }
  0xdd   :  { %v2970_v8 = vadd.f32 %v2503_v7, %v2317_v6 }
  0xde   :  { %v212_v9 = vpop.f32.mrf.mxu1 }
  0xdf   :  { %v2977_v11 = vadd.f32 %v2317_v6, %v212_v9  ;;  %271 = vrot.lane.b32.xlu0 %v2970_v8, %s2794_s5  ;;  %v262_v17 = vmul.f32 %v2970_v8, %v2991_v15  ;;  %v264_v21 = vmul.f32 %v2970_v8, %v3007_v19  ;;  %v266_v25 = vmul.f32 %v2970_v8, %v3023_v23 }
  0xe0   :  { %v268_v28 = vmul.f32 %v2970_v8, %v3039_v27 }
  0xe1   :  { %v261_v12 = vmul.f32 %v2977_v11, %v2975_v10  ;;  %v263_v18 = vmul.f32 %v2977_v11, %v2997_v16  ;;  %v265_v22 = vmul.f32 %v2977_v11, %v3013_v20  ;;  %v267_v26 = vmul.f32 %v2977_v11, %v3029_v24 }
  0xe3   :  { %269 = vrot.lane.b32.xlu0 %v2977_v11, %s2794_s5  ;;  %2508 = vmatprep.mubr.msk.f32.mxu1 %vm139_vm0, %v261_v12 }
 0x151   :  { %v272_v13 = vpop.permute.xlu0 %271 }
 0x152   :  { %2504 = vmatprep.subr.msk.mxu1 %vm139_vm0, %v272_v13 }
 0x153   :  { %2505 = vmatpush3.xpose.msk.msra.mxu1 %vm139_vm0, %v272_v13 }
 0x155   :  { %v270_v14 = vpop.permute.xlu0 %269 }
 0x156   :  { %2506 = vmatprep.subr.msk.mxu1 %vm139_vm0, %v270_v14 }
 0x157   :  { %2507 = vmatpush3.xpose.msk.msra.mxu1 %vm139_vm0, %v270_v14 }
 0x15a   :  { %2509 = vmatmul.mubr.msk.f32.vlgmr.msra.gmra.mxu1 %vm139_vm0, %v262_v17 }
 0x15b   :  { %2511 = vmatprep.mubr.msk.f32.mxu1 %vm139_vm0, %v263_v18 }
 0x15e   :  { %2512 = vmatmul.mubr.msk.f32.gmra.mxu1 %vm139_vm0, %v264_v21 }
 0x15f   :  { %2514 = vmatprep.mubr.msk.f32.mxu1 %vm139_vm0, %v265_v22 }
 0x162   :  { %2515 = vmatmul.mubr.msk.f32.gmra.mxu1 %vm139_vm0, %v266_v25 }
 0x163   :  { %2517 = vmatprep.mubr.msk.f32.mxu1 %vm139_vm0, %v267_v26 }
 0x166   :  { %2518 = vmatmul.mubr.msk.f32.gmra.mxu1 %vm139_vm0, %v268_v28 }
 0x21a   :  { %v2510_v30 = vpop.f32.mrf.mxu1 }
 0x21b   :  { %v373_v32 = vadd.f32 %v2510_v30, %v3049_v29 }
 0x21c   :  { %v367_v33 = vpop.f32.mrf.mxu1 }
 0x21d   :  { %v368_v35 = vadd.f32 %v367_v33, %v3054_v31  ;;  %v410_v36 = vsel %vm406_vm1, %v373_v32, -inf }
 0x21e   :  { %411 = vmax.xlane.f32.xlu1 %v410_v36  ;;  %v2513_v37 = vpop.f32.mrf.mxu1 }
 0x21f   :  { %v383_v39 = vadd.f32 %v2513_v37, %v3060_v34  ;;  %v407_v43 = vsel %vm406_vm1, %v368_v35, -inf }
 0x220   :  { %v377_v40 = vpop.f32.mrf.mxu1 }
 0x221   :  { %v378_v41 = vadd.f32 %v377_v40, %v3067_v38  ;;  %v416_v42 = vsel %vm406_vm1, %v383_v39, -inf }
 0x222   :  { %417 = vmax.xlane.f32.xlu0 %v416_v42  ;;  %v2516_v45 = vpop.f32.mrf.mxu1  ;;  %408 = vmax.xlane.f32.xlu1 %v407_v43 }
 0x223   :  { %v393_v46 = vadd.f32 %v2516_v45, %v3076_v44  ;;  %v413_v47 = vsel %vm406_vm1, %v378_v41, -inf }
 0x224   :  { %v387_v48 = vpop.f32.mrf.mxu1 }
 0x225   :  { %v388_v50 = vadd.f32 %v387_v48, %v3083_v49  ;;  %v422_v51 = vsel %vm406_vm1, %v393_v46, -inf }
 0x226   :  { %414 = vmax.xlane.f32.xlu1 %v413_v47  ;;  %v2519_v53 = vpop.f32.mrf.mxu1 }
 0x227   :  { %v403_v54 = vadd.f32 %v2519_v53, %v3090_v52  ;;  %v419_v55 = vsel %vm406_vm1, %v388_v50, -inf }
 0x228   :  { %v397_v56 = vpop.f32.mrf.mxu1 }
 0x229   :  { %v398_v58 = vadd.f32 %v397_v56, %v3097_v57  ;;  %v428_v59 = vsel %vm406_vm1, %v403_v54, -inf }
 0x22a   :  { %423 = vmax.xlane.f32.xlu1 %v422_v51 }
 0x22b   :  { %v425_v60 = vsel %vm406_vm1, %v398_v58, -inf }
 0x22e   :  { %420 = vmax.xlane.f32.xlu1 %v419_v55 }
 0x232   :  { %429 = vmax.xlane.f32.xlu1 %v428_v59 }
 0x236   :  { %426 = vmax.xlane.f32.xlu1 %v425_v60 }
 0x238   :  { %225 = vrot.lane.b32.xlu0 %v2970_v8, %s2795_s6 }
 0x247   :  { %223 = vrot.lane.b32.xlu1 %v2977_v11, %s2795_s6 }
 0x2a7   :  { %v412_v61 = vpop.xlane.xlu1 %411 }
 0x2a8   :  { %v432_v62 = vsub.f32 %v373_v32, %v412_v61 }
 0x2aa   :  { %v441_v63 = vmul.f32 1.442695, %v432_v62 }
 0x2ab   :  { %v418_v0 = vpop.xlane.xlu0 %417  ;;  %v409_v1 = vpop.xlane.xlu1 %408 }
 0x2ac   :  { %2692 = vpow2.f32 %v441_v63  ;;  %v434_v3 = vsub.f32 %v383_v39, %v418_v0  ;;  %v431_v4 = vsub.f32 %v368_v35, %v409_v1 }
 0x2ae   :  { %v445_v6 = vmul.f32 1.442695, %v434_v3  ;;  %v439_v7 = vmul.f32 1.442695, %v431_v4 }
 0x2af   :  { %v415_v9 = vpop.xlane.xlu1 %414  ;;  %v226_v56 = vpop.permute.xlu0 %225 }
 0x2b0   :  { %2694 = vpow2.f32 %v445_v6  ;;  %v433_v12 = vsub.f32 %v378_v41, %v415_v9 }
 0x2b1   :  { %2696 = vpow2.f32 %v439_v7 }
 0x2b2   :  { %v443_v13 = vmul.f32 1.442695, %v433_v12 }
 0x2b3   :  { %v424_v14 = vpop.xlane.xlu1 %423 }
 0x2b4   :  { %2698 = vpow2.f32 %v443_v13  ;;  %v436_v8 = vsub.f32 %v393_v46, %v424_v14 }
 0x2b6   :  { %v449_v17 = vmul.f32 1.442695, %v436_v8 }
 0x2b7   :  { %v421_v11 = vpop.xlane.xlu1 %420 }
 0x2b8   :  { %2700 = vpow2.f32 %v449_v17  ;;  %v435_v18 = vsub.f32 %v388_v50, %v421_v11 }
 0x2b9   :  { %v2693_v21 = vpop.eup %2692 }
 0x2ba   :  { %v447_v22 = vmul.f32 1.442695, %v435_v18  ;;  %v458_v25 = vsel %vm406_vm1, %v2693_v21, 0.0 }
 0x2bb   :  { %459 = vadd.xlane.f32.xlu1 %v458_v25  ;;  %v430_v26 = vpop.xlane.xlu1 %429 }
 0x2bc   :  { %2702 = vpow2.f32 %v447_v22  ;;  %v438_v28 = vsub.f32 %v403_v54, %v430_v26  ;;  %v2796_v54 = vmov 0.0  }
 0x2bd   :  { %v3107_v30 = vpop.eup %2694  ;;  %2520 = vmatprep.subr.mxu0 %v2796_v54  ;;  %2534 = vmatprep.subr.mxu1 %v2796_v54 }
 0x2be   :  { %v2697_v32 = vpop.eup %2696  ;;  %v453_v33 = vmul.f32 1.442695, %v438_v28  ;;  %v464_v35 = vsel %vm406_vm1, %v3107_v30, 0.0  ;;  %2524 = vmatprep.mubr.msk.f32.mxu0 %vm2797_vm2, %v2796_v54  ;;  %2538 = vmatprep.mubr.msk.f32.mxu1 %vm2797_vm2, %v2796_v54 }
 0x2bf   :  { %465 = vadd.xlane.f32.xlu0 %v464_v35  ;;  %v455_v36 = vsel %vm406_vm1, %v2697_v32, 0.0  ;;  %v427_v37 = vpop.xlane.xlu1 %426  ;;  %v113_v35 = vld [vmem:[%s3480_s11 + $0x18] sm:$0xff] }
 0x2c0   :  { %2704 = vpow2.f32 %v453_v33  ;;  %456 = vadd.xlane.f32.xlu1 %v455_v36  ;;  %v437_v39 = vsub.f32 %v398_v58, %v427_v37  ;;  %v112_v36 = vld [vmem:[%s3480_s11 + $0x10] sm:$0xff] }
 0x2c1   :  { %v3112_v40 = vpop.eup %2698 }
 0x2c2   :  { %v451_v41 = vmul.f32 1.442695, %v437_v39  ;;  %v461_v42 = vsel %vm406_vm1, %v3112_v40, 0.0  ;;  %v111_v39 = vld [vmem:[%s3480_s11 + $0x8] sm:$0xff] }
 0x2c3   :  { %v224_v55 = vpop.permute.xlu1 %223 }
 0x2c4   :  { %2706 = vpow2.f32 %v451_v41  ;;  %462 = vadd.xlane.f32.xlu1 %v461_v42  ;;  %v110_v41 = vld [vmem:[%s3480_s11] sm:$0xff] }
 0x2c5   :  { %v2701_v43 = vpop.eup %2700 }
 0x2c6   :  { %v470_v45 = vsel %vm406_vm1, %v2701_v43, 0.0 }
 0x2c8   :  { %471 = vadd.xlane.f32.xlu1 %v470_v45 }
 0x2c9   :  { %v2703_v46 = vpop.eup %2702 }
 0x2ca   :  { %v467_v47 = vsel %vm406_vm1, %v2703_v46, 0.0 }
 0x2cc   :  { %468 = vadd.xlane.f32.xlu1 %v467_v47 }
 0x2cd   :  { %v2705_v48 = vpop.eup %2704 }
 0x2ce   :  { %v476_v50 = vsel %vm406_vm1, %v2705_v48, 0.0 }
 0x2cf   :  { %477 = vadd.xlane.f32.xlu0 %v476_v50 }
 0x2d1   :  { %v3119_v51 = vpop.eup %2706 }
 0x2d2   :  { %v473_v53 = vsel %vm406_vm1, %v3119_v51, 0.0 }
 0x2d3   :  { %474 = vadd.xlane.f32.xlu0 %v473_v53  ;;  %v2342_v53 = vld [vmem:[%s3481_s10] ss:$0 sm:$0xff] }
 0x2ff   :  { %229 = vxpose.xlu1.b32.start [1/2] (short) (narrow) %v224_v55, 32 }
 0x303   :  { %230 = vxpose.xlu1.b32.end [2/2] (short) (narrow) %v226_v56, 32 }
 0x344   :  { %v460_v58 = vpop.xlane.xlu1 %459 }
 0x345   :  { %2708 = vrcp.f32 %v460_v58 }
 0x348   :  { %v466_v12 = vpop.xlane.xlu0 %465 }
 0x349   :  { %v457_v59 = vpop.xlane.xlu1 %456 }
 0x34a   :  { %2710 = vrcp.f32 %v457_v59 }
 0x34d   :  { %v463_v60 = vpop.xlane.xlu1 %462 }
 0x351   :  { %v472_v61 = vpop.xlane.xlu1 %471 }
 0x352   :  { %v2709_v62 = vpop.eup %2708  ;;  %2712 = vrcp.f32 %v472_v61 }
 0x353   :  { %v488_v63 = vmul.f32 %v2709_v62, %v2693_v21 }
 0x355   :  { %v469_v0 = vpop.xlane.xlu1 %468  ;;  %2521 = vmatpush3.xpose.msk.msra.mxu0 %vm406_vm1, %v488_v63 }
 0x356   :  { %2714 = vrcp.f32 %v469_v0  ;;  %2522 = vmatprep.subr.mxu0 %v2796_v54 }
 0x357   :  { %v2711_v1 = vpop.eup %2710  ;;  %2716 = vrcp.f32 %v466_v12  ;;  %v128_v12 = vld [vmem:[%s3483_s0 + $0x30] sm:$0xff] }
 0x358   :  { %v487_v3 = vmul.f32 %v2711_v1, %v2697_v32  ;;  %v478_v13 = vpop.xlane.xlu0 %477  ;;  %2718 = vrcp.f32 %v463_v60 }
 0x359   :  { %2720 = vrcp.f32 %v478_v13  ;;  %v127_v13 = vld [vmem:[%s3483_s0 + $0x28] sm:$0xff] }
 0x35a   :  { %2523 = vmatpush3.xpose.msk.msra.mxu0 %vm406_vm1, %v487_v3 }
 0x35b   :  { %2527 = vmatprep.subr.mxu0 %v2796_v54 }
 0x35c   :  { %v475_v14 = vpop.xlane.xlu0 %474 }
 0x35d   :  { %2722 = vrcp.f32 %v475_v14  ;;  %v126_v14 = vld [vmem:[%s3483_s0 + $0x20] sm:$0xff] }
 0x35f   :  { %v2713_v4 = vpop.eup %2712 }
 0x360   :  { %v492_v6 = vmul.f32 %v2713_v4, %v2701_v43 }
 0x362   :  { %2535 = vmatpush3.xpose.msk.msra.mxu1 %vm406_vm1, %v492_v6  ;;  %v118_v6 = vld [vmem:[%s3482_s9 + $0x8] sm:$0xff] }
 0x363   :  { %v2715_v7 = vpop.eup %2714  ;;  %2536 = vmatprep.subr.mxu1 %v2796_v54 }
 0x364   :  { %v491_v9 = vmul.f32 %v2715_v7, %v2703_v46  ;;  %v2717_v8 = vpop.eup %2716  ;;  %v117_v7 = vld [vmem:[%s3482_s9] sm:$0xff] }
 0x365   :  { %v490_v11 = vmul.f32 %v2717_v8, %v3107_v30  ;;  %v2719_v18 = vpop.eup %2718 }
 0x366   :  { %2537 = vmatpush3.xpose.msk.msra.mxu1 %vm406_vm1, %v491_v9  ;;  %v489_v21 = vmul.f32 %v2719_v18, %v3112_v40  ;;  %v2721_v25 = vpop.eup %2720  ;;  %v129_v9 = vld [vmem:[%s3483_s0 + $0x38] sm:$0xff] }
 0x367   :  { %v494_v26 = vmul.f32 %v2721_v25, %v2705_v48  ;;  %2548 = vmatprep.subr.mxu1 %v113_v35 }
 0x36a   :  { %v2723_v30 = vpop.eup %2722 }
 0x36b   :  { %v493_v32 = vmul.f32 %v2723_v30, %v3119_v51 }
 0x37b   :  { %v245_v17 = vpop.trf.xlu1 }
 0x37c   :  { %2525 = vmatmul.mubr.msk.f32.vlgmr.msra.gmra.mxu0 %vm406_vm1, %v245_v17 }
 0x37d   :  { %2528 = vmatpush3.xpose.msk.msra.mxu0 %vm406_vm1, %v490_v11  ;;  %2531 = vmatprep.mubr.msk.f32.mxu0 %vm2797_vm2, %v2796_v54 }
 0x37e   :  { %2529 = vmatprep.subr.mxu0 %v2796_v54 }
 0x37f   :  { %v246_v22 = vpop.trf.xlu1 }
 0x381   :  { %2530 = vmatpush3.xpose.msk.msra.mxu0 %vm406_vm1, %v489_v21 }
 0x382   :  { %2541 = vmatprep.subr.mxu0 %v2796_v54 }
 0x383   :  { %v247_v28 = vpop.trf.xlu1 }
 0x384   :  { %2532 = vmatmul.mubr.msk.f32.vlgmr.msra.gmra.mxu0 %vm406_vm1, %v246_v22  ;;  %2539 = vmatmul.mubr.msk.f32.vlgmr.msra.gmra.mxu1 %vm406_vm1, %v247_v28 }
 0x385   :  { %2542 = vmatpush3.xpose.msk.msra.mxu0 %vm406_vm1, %v494_v26  ;;  %2545 = vmatprep.mubr.msk.f32.mxu0 %vm2797_vm2, %v2796_v54 }
 0x386   :  { %2543 = vmatprep.subr.mxu0 %v2796_v54  ;;  %2549 = vmatpush3.msra.mxu1 %v113_v35 }
 0x387   :  { %v248_v33 = vpop.trf.xlu1  ;;  %2550 = vmatprep.subr.mxu1 %v112_v36 }
 0x388   :  { %2551 = vmatpush3.msra.mxu1 %v112_v36 }
 0x389   :  { %2544 = vmatpush3.xpose.msk.msra.mxu0 %vm406_vm1, %v493_v32  ;;  %2552 = vmatprep.subr.mxu1 %v111_v39 }
 0x38a   :  { %2553 = vmatpush3.msra.mxu1 %v111_v39 }
 0x38b   :  { %2554 = vmatprep.subr.mxu1 %v110_v41 }
 0x38c   :  { %2546 = vmatmul.mubr.msk.f32.vlgmr.msra.gmra.mxu0 %vm406_vm1, %v248_v33  ;;  %2555 = vmatpush3.msra.mxu1 %v110_v41  ;;  %v2345_v41 = vld [vmem:[%s3484_s4] ss:$0 sm:$0xff]  ;;  %s2798_s4 = smov [#allocation2]  }
 0x38d   :  { %2570 = vmatprep.subr.mxu1 %v129_v9  ;;  %s2306_s8 = sshll.u32 %s2798_s4, 4  ;;  %s2307_s8 = int_to_ptr.vmem [resolvable:$true] %s2306_s8 }
 0x38e   :  { %p2777_p1 = scmp.lt.s32.totalorder %s2307_s8, %s2307_s8 }
 0x43c   :  { %v570_v37 = vpop.f32.mrf.mxu0 }
 0x43d   :  { %811 = vxpose.xlu0.b32.start [1/4] (short) (narrow) %v570_v37, 16 }
 0x43e   :  { %v2526_v40 = vpop.f32.mrf.mxu0 }
 0x444   :  { %v649_v42 = vpop.f32.mrf.mxu0  ;;  %v728_v43 = vpop.f32.mrf.mxu1 }
 0x445   :  { %812 = vxpose.xlu0.b32.cont [2/4] (short) (narrow) %v649_v42, 16 }
 0x446   :  { %v2533_v45 = vpop.f32.mrf.mxu0  ;;  %v2540_v46 = vpop.f32.mrf.mxu1 }
 0x449   :  { %813 = vxpose.xlu0.b32.cont [3/4] (short) (narrow) %v728_v43, 16 }
 0x44c   :  { %v807_v47 = vpop.f32.mrf.mxu0 }
 0x44d   :  { %814 = vxpose.xlu0.b32.end [4/4] (short) (narrow) %v807_v47, 16  ;;  %v2346_v47 = vld [vmem:[%s3485_s28] ss:$0 sm:$0xff] }
 0x44e   :  { %v2547_v48 = vpop.f32.mrf.mxu0 }
 0x4bd   :  { %v827_v50 = vpop.trf.xlu0 }
 0x4be   :  { %2556 = vmatprep.mubr.msk.f32.mxu1 %vm139_vm0, %v827_v50 }
 0x4c1   :  { %v828_v51 = vpop.trf.xlu0 }
 0x4c2   :  { %2557 = vmatmul.mubr.msk.f32.vlgmr.msra.gmra.mxu1 %vm139_vm0, %v828_v51 }
 0x4c3   :  { %2571 = vmatpush3.msra.mxu1 %v129_v9 }
 0x4c4   :  { %2572 = vmatprep.subr.mxu1 %v128_v12 }
 0x4c5   :  { %2573 = vmatpush3.msra.mxu1 %v128_v12 }
 0x4c6   :  { %2574 = vmatprep.subr.mxu1 %v127_v13 }
 0x4c7   :  { %2575 = vmatpush3.msra.mxu1 %v127_v13 }
 0x4c8   :  { %2576 = vmatprep.subr.mxu1 %v126_v14 }
 0x4c9   :  { %2577 = vmatpush3.msra.mxu1 %v126_v14 }
 0x582   :  { %v2558_v55 = vpop.f32.mrf.mxu1 }
 0x583   :  { %v927_v56 = vadd.f32 %v2558_v55, %v2342_v53  ;;  %v124_v55 = vld [vmem:[%s3483_s0 + $0x10] sm:$0xff] }
 0x584   :  { %v921_v58 = vpop.f32.mrf.mxu1 }
 0x585   :  { %v931_v59 = vadd.f32 %v927_v56, %v2963_v5  ;;  %v922_v60 = vadd.f32 %v2342_v53, %v921_v58  ;;  %v120_v5 = vld [vmem:[%s3482_s9 + $0x18] sm:$0xff]  ;;  %v123_v56 = vld [vmem:[%s3483_s0 + $0x8] sm:$0xff]  ;;  %v122_v58 = vld [vmem:[%s3483_s0] sm:$0xff] }
 0x586   :  { %2559 = vmatprep.subr.mxu0 %v120_v5  ;;  %v125_v53 = vld [vmem:[%s3483_s0 + $0x18] sm:$0xff] }
 0x587   :  { %v930_v61 = vadd.f32 %v922_v60, %v2950_v2  ;;  %v935_v62 = vsel %vm139_vm0, %v931_v59, 0.0  ;;  %v942_v63 = vmul.f32 %v931_v59, %v931_v59  ;;  %v119_v2 = vld [vmem:[%s3482_s9 + $0x10] sm:$0xff]  ;;  %2560 = vmatpush3.msra.mxu0 %v120_v5  ;;  %2578 = vmatprep.subr.mxu1 %v125_v53 }
 0x588   :  { %936 = vadd.xlane.f32.xlu0 %v935_v62  ;;  %2561 = vmatprep.subr.mxu0 %v119_v2 }
 0x589   :  { %v932_v0 = vsel %vm139_vm0, %v930_v61, 0.0  ;;  %v941_v1 = vmul.f32 %v930_v61, %v930_v61  ;;  %v946_v3 = vsel %vm139_vm0, %v942_v63, 0.0  ;;  %2562 = vmatpush3.msra.mxu0 %v119_v2  ;;  %2579 = vmatpush3.msra.mxu1 %v125_v53 }
 0x58a   :  { %933 = vadd.xlane.f32.xlu1 %v932_v0  ;;  %2563 = vmatprep.subr.mxu0 %v118_v6 }
 0x58b   :  { %v943_v4 = vsel %vm139_vm0, %v941_v1, 0.0  ;;  %2564 = vmatpush3.msra.mxu0 %v118_v6  ;;  %2580 = vmatprep.subr.mxu1 %v124_v55 }
 0x58c   :  { %947 = vadd.xlane.f32.xlu0 %v946_v3  ;;  %2565 = vmatprep.subr.mxu0 %v117_v7  ;;  %v2350_v3 = vld [vmem:[%s3440_s12] ss:$0 sm:$0xff] }
 0x58d   :  { %2566 = vmatpush3.msra.mxu0 %v117_v7  ;;  %2581 = vmatpush3.msra.mxu1 %v124_v55 }
 0x58e   :  { %944 = vadd.xlane.f32.xlu1 %v943_v4  ;;  %2582 = vmatprep.subr.mxu1 %v123_v56 }
 0x58f   :  { %2583 = vmatpush3.msra.mxu1 %v123_v56 }
 0x590   :  { %2584 = vmatprep.subr.mxu1 %v122_v58 }
 0x591   :  { %2585 = vmatpush3.msra.mxu1 %v122_v58  ;;  %v2354_v58 = vld [vmem:[%s3442_s14] ss:$0 sm:$0xff] }
 0x592   :  { %2616 = vmatprep.subr.mxu1 %v2796_v54 }
 0x611   :  { %v937_v8 = vpop.xlane.xlu0 %936 }
 0x612   :  { %v940_v17 = vmul.f32 0.03125, %v937_v8 }
 0x613   :  { %v934_v11 = vpop.xlane.xlu1 %933 }
 0x614   :  { %v939_v18 = vmul.f32 0.03125, %v934_v11  ;;  %v952_v22 = vmul.f32 %v940_v17, %v940_v17  ;;  %v956_v37 = vsub.f32 %v931_v59, %v940_v17  ;;  %v2347_v59 = vld [vmem:[%s3486_s30] ss:$0 sm:$0xff] }
 0x615   :  { %v948_v21 = vpop.xlane.xlu0 %947 }
 0x616   :  { %v950_v25 = vmul.f32 0.03125, %v948_v21  ;;  %v951_v28 = vmul.f32 %v939_v18, %v939_v18  ;;  %v955_v40 = vsub.f32 %v930_v61, %v939_v18  ;;  %v1207_v18 = vld [vmem:[%s3443_s15 + $0x18] sm:$0xff]  ;;  %v1206_v21 = vld [vmem:[%s3443_s15 + $0x10] sm:$0xff] }
 0x617   :  { %v945_v26 = vpop.xlane.xlu1 %944  ;;  %2589 = vmatprep.subr.mxu0 %v1207_v18 }
 0x618   :  { %v954_v30 = vsub.f32 %v950_v25, %v952_v22  ;;  %v949_v32 = vmul.f32 0.03125, %v945_v26  ;;  %v1205_v22 = vld [vmem:[%s3443_s15 + $0x8] sm:$0xff]  ;;  %v1204_v25 = vld [vmem:[%s3443_s15] sm:$0xff] }
 0x61a   :  { %v958_v33 = vadd.f32 1e-05, %v954_v30  ;;  %v953_v35 = vsub.f32 %v949_v32, %v951_v28 }
 0x61c   :  { %2724 = vrsqrt.f32 %v958_v33  ;;  %v957_v36 = vadd.f32 1e-05, %v953_v35 }
 0x61e   :  { %2726 = vrsqrt.f32 %v957_v36 }
 0x629   :  { %v2725_v39 = vpop.eup %2724 }
 0x62a   :  { %v962_v42 = vmul.f32 %v2725_v39, %v956_v37 }
 0x62b   :  { %v2727_v43 = vpop.eup %2726 }
 0x62c   :  { %v961_v45 = vmul.f32 %v2727_v43, %v955_v40  ;;  %v970_v46 = vmul.f32 %v2345_v41, %v962_v42 }
 0x62e   :  { %v969_v48 = vmul.f32 %v2345_v41, %v961_v45  ;;  %v978_v51 = vadd.f32 %v2346_v47, %v970_v46 }
 0x630   :  { %v977_v50 = vadd.f32 %v2346_v47, %v969_v48 }
 0x632   :  { %2567 = vmatprep.mubr.msk.f32.mxu0 %vm139_vm0, %v977_v50 }
 0x633   :  { %2568 = vmatmul.mubr.msk.f32.vlgmr.msra.gmra.mxu0 %vm139_vm0, %v978_v51 }
 0x634   :  { %2590 = vmatpush3.msra.mxu0 %v1207_v18 }
 0x635   :  { %2591 = vmatprep.subr.mxu0 %v1206_v21 }
 0x636   :  { %2592 = vmatpush3.msra.mxu0 %v1206_v21 }
 0x637   :  { %2593 = vmatprep.subr.mxu0 %v1205_v22 }
 0x638   :  { %2594 = vmatpush3.msra.mxu0 %v1205_v22 }
 0x639   :  { %2595 = vmatprep.subr.mxu0 %v1204_v25 }
 0x63a   :  { %2596 = vmatpush3.msra.mxu0 %v1204_v25 }
 0x6f3   :  { %v2569_v60 = vpop.f32.mrf.mxu0 }
 0x6f4   :  { %v1063_v61 = vadd.f32 %v2569_v60, %v2347_v59 }
 0x6f5   :  { %v1057_v62 = vpop.f32.mrf.mxu0 }
 0x6f6   :  { %v1058_v63 = vadd.f32 %v2347_v59, %v1057_v62  ;;  %v1067_v1 = vmax.f32 %v1063_v61, 0.0  ;;  %v2355_v62 = vld [vmem:[%s3444_s16] ss:$0 sm:$0xff] }
 0x6f8   :  { %v1066_v0 = vmax.f32 %v1058_v63, 0.0 }
 0x6fa   :  { %2586 = vmatprep.mubr.msk.f32.mxu1 %vm1074_vm3, %v1066_v0 }
 0x6fb   :  { %2587 = vmatmul.mubr.msk.f32.vlgmr.msra.gmra.mxu1 %vm1074_vm3, %v1067_v1 }
 0x6fc   :  { %2620 = vmatprep.mubr.msk.f32.mxu1 %vm2797_vm2, %v2796_v54 }
 0x7bb   :  { %v2588_v4 = vpop.f32.mrf.mxu1 }
 0x7bc   :  { %v1153_v5 = vadd.f32 %v2588_v4, %v2350_v3 }
 0x7bd   :  { %v1147_v2 = vpop.f32.mrf.mxu1 }
 0x7be   :  { %v1157_v6 = vadd.f32 %v1153_v5, %v978_v51  ;;  %v1148_v7 = vadd.f32 %v2350_v3, %v1147_v2 }
 0x7c0   :  { %v1156_v9 = vadd.f32 %v1148_v7, %v977_v50  ;;  %v1161_v12 = vsel %vm139_vm0, %v1157_v6, 0.0  ;;  %v1167_v13 = vmul.f32 %v1157_v6, %v1157_v6  ;;  %v2353_v50 = vld [vmem:[%s3441_s13] ss:$0 sm:$0xff] }
 0x7c1   :  { %1162 = vadd.xlane.f32.xlu0 %v1161_v12 }
 0x7c2   :  { %v1158_v14 = vsel %vm139_vm0, %v1156_v9, 0.0  ;;  %v1166_v8 = vmul.f32 %v1156_v9, %v1156_v9  ;;  %v1171_v17 = vsel %vm139_vm0, %v1167_v13, 0.0 }
 0x7c3   :  { %1159 = vadd.xlane.f32.xlu1 %v1158_v14 }
 0x7c4   :  { %v1168_v11 = vsel %vm139_vm0, %v1166_v8, 0.0 }
 0x7c5   :  { %1172 = vadd.xlane.f32.xlu0 %v1171_v17 }
 0x7c7   :  { %1169 = vadd.xlane.f32.xlu1 %v1168_v11 }
 0x84a   :  { %v1163_v26 = vpop.xlane.xlu0 %1162 }
 0x84b   :  { %v1165_v28 = vmul.f32 0.03125, %v1163_v26 }
 0x84c   :  { %v1160_v30 = vpop.xlane.xlu1 %1159 }
 0x84d   :  { %v1164_v32 = vmul.f32 0.03125, %v1160_v30  ;;  %v1177_v35 = vmul.f32 %v1165_v28, %v1165_v28  ;;  %v1181_v46 = vsub.f32 %v1157_v6, %v1165_v28 }
 0x84e   :  { %v1173_v33 = vpop.xlane.xlu0 %1172 }
 0x84f   :  { %v1175_v36 = vmul.f32 0.03125, %v1173_v33  ;;  %v1176_v39 = vmul.f32 %v1164_v32, %v1164_v32  ;;  %v1180_v48 = vsub.f32 %v1156_v9, %v1164_v32 }
 0x850   :  { %v1170_v37 = vpop.xlane.xlu1 %1169 }
 0x851   :  { %v1179_v40 = vsub.f32 %v1175_v36, %v1177_v35  ;;  %v1174_v41 = vmul.f32 0.03125, %v1170_v37 }
 0x853   :  { %v1183_v42 = vadd.f32 1e-05, %v1179_v40  ;;  %v1178_v43 = vsub.f32 %v1174_v41, %v1176_v39 }
 0x855   :  { %2728 = vrsqrt.f32 %v1183_v42  ;;  %v1182_v45 = vadd.f32 1e-05, %v1178_v43 }
 0x857   :  { %2730 = vrsqrt.f32 %v1182_v45 }
 0x862   :  { %v2729_v47 = vpop.eup %2728 }
 0x863   :  { %v1187_v51 = vmul.f32 %v2729_v47, %v1181_v46 }
 0x864   :  { %v2731_v53 = vpop.eup %2730 }
 0x865   :  { %v1186_v55 = vmul.f32 %v2731_v53, %v1180_v48  ;;  %v1195_v56 = vmul.f32 %v2353_v50, %v1187_v51 }
 0x867   :  { %v1194_v59 = vmul.f32 %v2353_v50, %v1186_v55  ;;  %v3256_v61 = vadd.f32 %v2354_v58, %v1195_v56 }
 0x869   :  { %v3254_v60 = vadd.f32 %v2354_v58, %v1194_v59 }
 0x86b   :  { %2597 = vmatprep.mubr.msk.f32.mxu0 %vm139_vm0, %v3254_v60 }
 0x86c   :  { %2598 = vmatmul.mubr.msk.f32.vlgmr.msra.gmra.mxu0 %vm139_vm0, %v3256_v61 }
 0x92c   :  { %v2599_v63 = vpop.f32.mrf.mxu0 }
 0x92d   :  { %v1316_v0 = vadd.f32 %v2599_v63, %v2355_v62 }
 0x92e   :  { %v1310_v1 = vpop.f32.mrf.mxu0 }
 0x92f   :  { %v1311_v3 = vadd.f32 %v2355_v62, %v1310_v1  ;;  %1369 = vrot.lane.b32.xlu1 %v1316_v0, %s2794_s5  ;;  %v1360_v6 = vmul.f32 %v1316_v0, %v2991_v15  ;;  %v1364_v12 = vmul.f32 %v1316_v0, %v3023_v23 }
 0x931   :  { %1367 = vrot.lane.b32.xlu0 %v1311_v3, %s2794_s5  ;;  %v1359_v4 = vmul.f32 %v1311_v3, %v2975_v10  ;;  %v1361_v7 = vmul.f32 %v1311_v3, %v2997_v16  ;;  %v1362_v10 = vmul.f32 %v1316_v0, %v3007_v19  ;;  %v1363_v9 = vmul.f32 %v1311_v3, %v3013_v20 }
 0x932   :  { %v1365_v15 = vmul.f32 %v1311_v3, %v3029_v24  ;;  %v1366_v16 = vmul.f32 %v1316_v0, %v3039_v27 }
 0x933   :  { %2604 = vmatprep.mubr.msk.f32.mxu0 %vm139_vm0, %v1359_v4 }
 0x9a1   :  { %v1370_v5 = vpop.permute.xlu1 %1369 }
 0x9a2   :  { %2600 = vmatprep.subr.msk.mxu0 %vm139_vm0, %v1370_v5 }
 0x9a3   :  { %2601 = vmatpush3.xpose.msk.msra.mxu0 %vm139_vm0, %v1370_v5  ;;  %v1368_v2 = vpop.permute.xlu0 %1367 }
 0x9a4   :  { %2602 = vmatprep.subr.msk.mxu0 %vm139_vm0, %v1368_v2 }
 0x9a7   :  { %2603 = vmatpush3.xpose.msk.msra.mxu0 %vm139_vm0, %v1368_v2 }
 0x9a8   :  { %2630 = vmatprep.subr.mxu0 %v2796_v54 }
 0x9aa   :  { %2605 = vmatmul.mubr.msk.f32.vlgmr.msra.gmra.mxu0 %vm139_vm0, %v1360_v6 }
 0x9ab   :  { %2607 = vmatprep.mubr.msk.f32.mxu0 %vm139_vm0, %v1361_v7 }
 0x9ae   :  { %2608 = vmatmul.mubr.msk.f32.gmra.mxu0 %vm139_vm0, %v1362_v10 }
 0x9af   :  { %2610 = vmatprep.mubr.msk.f32.mxu0 %vm139_vm0, %v1363_v9 }
 0x9b2   :  { %2611 = vmatmul.mubr.msk.f32.gmra.mxu0 %vm139_vm0, %v1364_v12 }
 0x9b3   :  { %2613 = vmatprep.mubr.msk.f32.mxu0 %vm139_vm0, %v1365_v15 }
 0x9b6   :  { %2614 = vmatmul.mubr.msk.f32.gmra.mxu0 %vm139_vm0, %v1366_v16 }
 0x9b7   :  { %2634 = vmatprep.mubr.msk.f32.mxu0 %vm2797_vm2, %v2796_v54 }
 0xa6a   :  { %v2606_v19 = vpop.f32.mrf.mxu0 }
 0xa6b   :  { %v1471_v20 = vadd.f32 %v2606_v19, %v3049_v29 }
 0xa6c   :  { %v1465_v13 = vpop.f32.mrf.mxu0 }
 0xa6d   :  { %v1466_v14 = vadd.f32 %v1465_v13, %v3054_v31  ;;  %v1507_v23 = vsel %vm406_vm1, %v1471_v20, -inf }
 0xa6e   :  { %1508 = vmax.xlane.f32.xlu1 %v1507_v23  ;;  %v2609_v24 = vpop.f32.mrf.mxu0 }
 0xa6f   :  { %v1481_v8 = vadd.f32 %v2609_v24, %v3060_v34  ;;  %v1504_v17 = vsel %vm406_vm1, %v1466_v14, -inf }
 0xa70   :  { %v1475_v27 = vpop.f32.mrf.mxu0  ;;  %1505 = vmax.xlane.f32.xlu0 %v1504_v17 }
 0xa71   :  { %v1476_v11 = vadd.f32 %v1475_v27, %v3067_v38  ;;  %v1513_v18 = vsel %vm406_vm1, %v1481_v8, -inf }
 0xa72   :  { %1514 = vmax.xlane.f32.xlu1 %v1513_v18  ;;  %v2612_v21 = vpop.f32.mrf.mxu0 }
 0xa73   :  { %v1491_v29 = vadd.f32 %v2612_v21, %v3076_v44  ;;  %v1510_v31 = vsel %vm406_vm1, %v1476_v11, -inf }
 0xa74   :  { %v1485_v22 = vpop.f32.mrf.mxu0  ;;  %1511 = vmax.xlane.f32.xlu0 %v1510_v31 }
 0xa75   :  { %v1486_v25 = vadd.f32 %v1485_v22, %v3083_v49  ;;  %v1519_v34 = vsel %vm406_vm1, %v1491_v29, -inf }
 0xa76   :  { %1520 = vmax.xlane.f32.xlu1 %v1519_v34  ;;  %v2615_v26 = vpop.f32.mrf.mxu0 }
 0xa77   :  { %v1501_v28 = vadd.f32 %v2615_v26, %v3090_v52  ;;  %v1516_v32 = vsel %vm406_vm1, %v1486_v25, -inf }
 0xa78   :  { %v1495_v30 = vpop.f32.mrf.mxu0 }
 0xa79   :  { %v1496_v38 = vadd.f32 %v1495_v30, %v3097_v57  ;;  %v1525_v33 = vsel %vm406_vm1, %v1501_v28, -inf }
 0xa7a   :  { %1517 = vmax.xlane.f32.xlu1 %v1516_v32  ;;  %1526 = vmax.xlane.f32.xlu0 %v1525_v33 }
 0xa7b   :  { %v1522_v44 = vsel %vm406_vm1, %v1496_v38, -inf }
 0xa7e   :  { %1523 = vmax.xlane.f32.xlu0 %v1522_v44 }
 0xa8b   :  { %1323 = vrot.lane.b32.xlu1 %v1316_v0, %s2795_s6 }
 0xa94   :  { %1321 = vrot.lane.b32.xlu0 %v1311_v3, %s2795_s6 }
 0xaf7   :  { %v1509_v49 = vpop.xlane.xlu1 %1508 }
 0xaf8   :  { %v1529_v35 = vsub.f32 %v1471_v20, %v1509_v49 }
 0xaf9   :  { %v1506_v36 = vpop.xlane.xlu0 %1505 }
 0xafa   :  { %v1538_v52 = vmul.f32 1.442695, %v1529_v35  ;;  %v1528_v37 = vsub.f32 %v1466_v14, %v1506_v36 }
 0xafb   :  { %v1515_v39 = vpop.xlane.xlu1 %1514 }
 0xafc   :  { %2732 = vpow2.f32 %v1538_v52  ;;  %v1536_v57 = vmul.f32 1.442695, %v1528_v37  ;;  %v1531_v40 = vsub.f32 %v1481_v8, %v1515_v39 }
 0xafd   :  { %v1512_v41 = vpop.xlane.xlu0 %1511 }
 0xafe   :  { %2734 = vpow2.f32 %v1536_v57  ;;  %v1542_v42 = vmul.f32 1.442695, %v1531_v40  ;;  %v1530_v43 = vsub.f32 %v1476_v11, %v1512_v41 }
 0xaff   :  { %v1521_v45 = vpop.xlane.xlu1 %1520 }
 0xb00   :  { %2736 = vpow2.f32 %v1542_v42  ;;  %v1540_v46 = vmul.f32 1.442695, %v1530_v43  ;;  %v1533_v47 = vsub.f32 %v1491_v29, %v1521_v45  ;;  %v1212_v42 = vld [vmem:[%s3445_s17 + $0x18] sm:$0xff]  ;;  %v1211_v43 = vld [vmem:[%s3445_s17 + $0x10] sm:$0xff] }
 0xb02   :  { %2738 = vpow2.f32 %v1540_v46  ;;  %v1546_v48 = vmul.f32 1.442695, %v1533_v47  ;;  %v1209_v47 = vld [vmem:[%s3445_s17] sm:$0xff] }
 0xb03   :  { %v1518_v50 = vpop.xlane.xlu1 %1517  ;;  %v1527_v51 = vpop.xlane.xlu0 %1526 }
 0xb04   :  { %2740 = vpow2.f32 %v1546_v48  ;;  %v1532_v53 = vsub.f32 %v1486_v25, %v1518_v50  ;;  %v1535_v55 = vsub.f32 %v1501_v28, %v1527_v51 }
 0xb06   :  { %v1544_v56 = vmul.f32 1.442695, %v1532_v53  ;;  %v1550_v58 = vmul.f32 1.442695, %v1535_v55 }
 0xb07   :  { %v1524_v59 = vpop.xlane.xlu0 %1523  ;;  %v1324_v23 = vpop.permute.xlu1 %1323 }
 0xb08   :  { %2742 = vpow2.f32 %v1544_v56  ;;  %v1534_v62 = vsub.f32 %v1496_v38, %v1524_v59 }
 0xb09   :  { %v2733_v63 = vpop.eup %2732  ;;  %2744 = vpow2.f32 %v1550_v58 }
 0xb0a   :  { %v1548_v0 = vmul.f32 1.442695, %v1534_v62  ;;  %v1555_v1 = vsel %vm406_vm1, %v2733_v63, 0.0  ;;  %v2380_v62 = vld [vmem:[%s3446_s18] ss:$0 sm:$0xff] }
 0xb0b   :  { %v2735_v3 = vpop.eup %2734  ;;  %1556 = vadd.xlane.f32.xlu1 %v1555_v1  ;;  %v1322_v14 = vpop.permute.xlu0 %1321 }
 0xb0c   :  { %2746 = vpow2.f32 %v1548_v0  ;;  %v1552_v2 = vsel %vm406_vm1, %v2735_v3, 0.0 }
 0xb0d   :  { %v2737_v4 = vpop.eup %2736 }
 0xb0e   :  { %v1561_v5 = vsel %vm406_vm1, %v2737_v4, 0.0 }
 0xb0f   :  { %v2739_v6 = vpop.eup %2738  ;;  %1562 = vadd.xlane.f32.xlu0 %v1561_v5  ;;  %1553 = vadd.xlane.f32.xlu1 %v1552_v2 }
 0xb10   :  { %v1558_v9 = vsel %vm406_vm1, %v2739_v6, 0.0 }
 0xb11   :  { %v2741_v7 = vpop.eup %2740 }
 0xb12   :  { %v1567_v10 = vsel %vm406_vm1, %v2741_v7, 0.0 }
 0xb13   :  { %1568 = vadd.xlane.f32.xlu1 %v1567_v10  ;;  %1559 = vadd.xlane.f32.xlu0 %v1558_v9 }
 0xb15   :  { %v2743_v12 = vpop.eup %2742 }
 0xb16   :  { %v2745_v15 = vpop.eup %2744  ;;  %v1564_v16 = vsel %vm406_vm1, %v2743_v12, 0.0 }
 0xb17   :  { %1565 = vadd.xlane.f32.xlu1 %v1564_v16  ;;  %v1573_v19 = vsel %vm406_vm1, %v2745_v15, 0.0  ;;  %v1216_v16 = vld [vmem:[%s3449_s21] sm:$0xff] }
 0xb18   :  { %1574 = vadd.xlane.f32.xlu0 %v1573_v19  ;;  %v1228_v19 = vld [vmem:[%s3451_s23 + $0x38] sm:$0xff] }
 0xb19   :  { %v2747_v20 = vpop.eup %2746 }
 0xb1a   :  { %v1570_v13 = vsel %vm406_vm1, %v2747_v20, 0.0 }
 0xb1c   :  { %1571 = vadd.xlane.f32.xlu0 %v1570_v13  ;;  %v1226_v13 = vld [vmem:[%s3451_s23 + $0x28] sm:$0xff] }
 0xb4a   :  { %1327 = vxpose.xlu1.b32.start [1/2] (short) (narrow) %v1322_v14, 32  ;;  %v1225_v14 = vld [vmem:[%s3451_s23 + $0x20] sm:$0xff] }
 0xb4e   :  { %1328 = vxpose.xlu1.b32.end [2/2] (short) (narrow) %v1324_v23, 32 }
 0xb94   :  { %v1557_v24 = vpop.xlane.xlu1 %1556 }
 0xb95   :  { %2748 = vrcp.f32 %v1557_v24 }
 0xb98   :  { %v1554_v8 = vpop.xlane.xlu1 %1553  ;;  %v1563_v25 = vpop.xlane.xlu0 %1562 }
 0xb99   :  { %2750 = vrcp.f32 %v1554_v8 }
 0xb9c   :  { %v1569_v17 = vpop.xlane.xlu1 %1568  ;;  %v1560_v28 = vpop.xlane.xlu0 %1559 }
 0xb9d   :  { %2752 = vrcp.f32 %v1569_v17 }
 0xba0   :  { %v1566_v27 = vpop.xlane.xlu1 %1565 }
 0xba1   :  { %2754 = vrcp.f32 %v1566_v27  ;;  %v1575_v30 = vpop.xlane.xlu0 %1574 }
 0xba2   :  { %v2749_v11 = vpop.eup %2748  ;;  %2756 = vrcp.f32 %v1563_v25 }
 0xba3   :  { %v1585_v18 = vmul.f32 %v2749_v11, %v2733_v63  ;;  %2758 = vrcp.f32 %v1560_v28 }
 0xba4   :  { %2760 = vrcp.f32 %v1575_v30 }
 0xba5   :  { %2617 = vmatpush3.xpose.msk.msra.mxu1 %vm406_vm1, %v1585_v18  ;;  %v1572_v38 = vpop.xlane.xlu0 %1571 }
 0xba6   :  { %v2751_v21 = vpop.eup %2750  ;;  %2618 = vmatprep.subr.mxu1 %v2796_v54  ;;  %2762 = vrcp.f32 %v1572_v38 }
 0xba7   :  { %v1584_v29 = vmul.f32 %v2751_v21, %v2735_v3 }
 0xba9   :  { %2619 = vmatpush3.xpose.msk.msra.mxu1 %vm406_vm1, %v1584_v29 }
 0xbaa   :  { %v2753_v31 = vpop.eup %2752  ;;  %2623 = vmatprep.subr.mxu1 %v2796_v54 }
 0xbab   :  { %v1589_v22 = vmul.f32 %v2753_v31, %v2741_v7 }
 0xbad   :  { %2631 = vmatpush3.xpose.msk.msra.mxu0 %vm406_vm1, %v1589_v22 }
 0xbae   :  { %v2755_v34 = vpop.eup %2754  ;;  %2632 = vmatprep.subr.mxu0 %v2796_v54 }
 0xbaf   :  { %v1588_v26 = vmul.f32 %v2755_v34, %v2743_v12  ;;  %v2757_v32 = vpop.eup %2756 }
 0xbb0   :  { %v1587_v44 = vmul.f32 %v2757_v32, %v2737_v4  ;;  %v2759_v49 = vpop.eup %2758  ;;  %v2383_v32 = vld [vmem:[%s3447_s19] ss:$0 sm:$0xff] }
 0xbb1   :  { %2633 = vmatpush3.xpose.msk.msra.mxu0 %vm406_vm1, %v1588_v26  ;;  %v1586_v36 = vmul.f32 %v2759_v49, %v2739_v6  ;;  %v2761_v52 = vpop.eup %2760 }
 0xbb2   :  { %v1591_v39 = vmul.f32 %v2761_v52, %v2745_v15  ;;  %2644 = vmatprep.subr.mxu0 %v1212_v42  ;;  %v1217_v15 = vld [vmem:[%s3449_s21 + $0x8] sm:$0xff] }
 0xbb3   :  { %v2763_v57 = vpop.eup %2762 }
 0xbb4   :  { %v1590_v40 = vmul.f32 %v2763_v57, %v2747_v20  ;;  %v1227_v20 = vld [vmem:[%s3451_s23 + $0x30] sm:$0xff]  ;;  %v1224_v57 = vld [vmem:[%s3451_s23 + $0x18] sm:$0xff] }
 0xbc6   :  { %v1343_v33 = vpop.trf.xlu1 }
 0xbc7   :  { %2621 = vmatmul.mubr.msk.f32.vlgmr.msra.gmra.mxu1 %vm406_vm1, %v1343_v33 }
 0xbc8   :  { %2624 = vmatpush3.xpose.msk.msra.mxu1 %vm406_vm1, %v1587_v44  ;;  %2627 = vmatprep.mubr.msk.f32.mxu1 %vm2797_vm2, %v2796_v54 }
 0xbc9   :  { %2625 = vmatprep.subr.mxu1 %v2796_v54 }
 0xbca   :  { %v1344_v35 = vpop.trf.xlu1 }
 0xbcc   :  { %2626 = vmatpush3.xpose.msk.msra.mxu1 %vm406_vm1, %v1586_v36  ;;  %v2384_v36 = vld [vmem:[%s3448_s20] ss:$0 sm:$0xff] }
 0xbcd   :  { %2637 = vmatprep.subr.mxu1 %v2796_v54 }
 0xbce   :  { %v1345_v37 = vpop.trf.xlu1 }
 0xbcf   :  { %2628 = vmatmul.mubr.msk.f32.vlgmr.msra.gmra.mxu1 %vm406_vm1, %v1344_v35  ;;  %2635 = vmatmul.mubr.msk.f32.vlgmr.msra.gmra.mxu0 %vm406_vm1, %v1345_v37 }
 0xbd0   :  { %2638 = vmatpush3.xpose.msk.msra.mxu1 %vm406_vm1, %v1591_v39  ;;  %2641 = vmatprep.mubr.msk.f32.mxu1 %vm2797_vm2, %v2796_v54 }
 0xbd1   :  { %2639 = vmatprep.subr.mxu1 %v2796_v54  ;;  %2645 = vmatpush3.msra.mxu0 %v1212_v42  ;;  %v1210_v54 = vld [vmem:[%s3445_s17 + $0x8] sm:$0xff]  ;;  %v1221_v42 = vld [vmem:[%s3451_s23] sm:$0xff] }
 0xbd2   :  { %v1346_v41 = vpop.trf.xlu1  ;;  %2646 = vmatprep.subr.mxu0 %v1211_v43 }
 0xbd3   :  { %2647 = vmatpush3.msra.mxu0 %v1211_v43  ;;  %v2385_v43 = vld [vmem:[%s3450_s22] ss:$0 sm:$0xff] }
 0xbd4   :  { %2640 = vmatpush3.xpose.msk.msra.mxu1 %vm406_vm1, %v1590_v40  ;;  %2648 = vmatprep.subr.mxu0 %v1210_v54  ;;  %v1223_v40 = vld [vmem:[%s3451_s23 + $0x10] sm:$0xff] }
 0xbd5   :  { %2649 = vmatpush3.msra.mxu0 %v1210_v54 }
 0xbd6   :  { %2650 = vmatprep.subr.mxu0 %v1209_v47 }
 0xbd7   :  { %2642 = vmatmul.mubr.msk.f32.vlgmr.msra.gmra.mxu1 %vm406_vm1, %v1346_v41  ;;  %2651 = vmatpush3.msra.mxu0 %v1209_v47  ;;  %v1222_v41 = vld [vmem:[%s3451_s23 + $0x8] sm:$0xff] }
 0xbd8   :  { %2666 = vmatprep.subr.mxu0 %v1228_v19 }
 0xc87   :  { %v1667_v45 = vpop.f32.mrf.mxu1 }
 0xc88   :  { %1908 = vxpose.xlu0.b32.start [1/4] (short) (narrow) %v1667_v45, 16 }
 0xc89   :  { %v2622_v46 = vpop.f32.mrf.mxu1 }
 0xc8f   :  { %v1746_v48 = vpop.f32.mrf.mxu1  ;;  %v1825_v50 = vpop.f32.mrf.mxu0 }
 0xc90   :  { %1909 = vxpose.xlu0.b32.cont [2/4] (short) (narrow) %v1746_v48, 16 }
 0xc91   :  { %v2629_v51 = vpop.f32.mrf.mxu1  ;;  %v2636_v53 = vpop.f32.mrf.mxu0 }
 0xc92   :  { %v2388_v51 = vld [vmem:[%s3452_s24] ss:$0 sm:$0xff] }
 0xc94   :  { %1910 = vxpose.xlu0.b32.cont [3/4] (short) (narrow) %v1825_v50, 16 }
 0xc97   :  { %v1904_v55 = vpop.f32.mrf.mxu1 }
 0xc98   :  { %1911 = vxpose.xlu0.b32.end [4/4] (short) (narrow) %v1904_v55, 16 }
 0xc99   :  { %v2643_v56 = vpop.f32.mrf.mxu1 }
 0xd08   :  { %v1924_v58 = vpop.trf.xlu0 }
 0xd09   :  { %2652 = vmatprep.mubr.msk.f32.mxu0 %vm139_vm0, %v1924_v58 }
 0xd0c   :  { %v1925_v59 = vpop.trf.xlu0 }
 0xd0d   :  { %2653 = vmatmul.mubr.msk.f32.vlgmr.msra.gmra.mxu0 %vm139_vm0, %v1925_v59 }
 0xd0e   :  { %2667 = vmatpush3.msra.mxu0 %v1228_v19 }
 0xd0f   :  { %2668 = vmatprep.subr.mxu0 %v1227_v20 }
 0xd10   :  { %2669 = vmatpush3.msra.mxu0 %v1227_v20 }
 0xd11   :  { %2670 = vmatprep.subr.mxu0 %v1226_v13 }
 0xd12   :  { %2671 = vmatpush3.msra.mxu0 %v1226_v13 }
 0xd13   :  { %2672 = vmatprep.subr.mxu0 %v1225_v14 }
 0xd14   :  { %2673 = vmatpush3.msra.mxu0 %v1225_v14 }
 0xd15   :  { %2674 = vmatprep.subr.mxu0 %v1224_v57 }
 0xd16   :  { %2675 = vmatpush3.msra.mxu0 %v1224_v57 }
 0xd17   :  { %2676 = vmatprep.subr.mxu0 %v1223_v40 }
 0xd18   :  { %2677 = vmatpush3.msra.mxu0 %v1223_v40 }
 0xd19   :  { %2678 = vmatprep.subr.mxu0 %v1222_v41 }
 0xd1a   :  { %2679 = vmatpush3.msra.mxu0 %v1222_v41 }
 0xd1b   :  { %2680 = vmatprep.subr.mxu0 %v1221_v42 }
 0xd1c   :  { %2681 = vmatpush3.msra.mxu0 %v1221_v42 }
 0xdcd   :  { %v2654_v63 = vpop.f32.mrf.mxu0 }
 0xdce   :  { %v2024_v0 = vadd.f32 %v2654_v63, %v2380_v62 }
 0xdcf   :  { %v2018_v1 = vpop.f32.mrf.mxu0 }
 0xdd0   :  { %v2028_v3 = vadd.f32 %v2024_v0, %v3256_v61  ;;  %v2019_v4 = vadd.f32 %v2380_v62, %v2018_v1  ;;  %v1219_v61 = vld [vmem:[%s3449_s21 + $0x18] sm:$0xff] }
 0xdd1   :  { %2655 = vmatprep.subr.mxu1 %v1219_v61 }
 0xdd2   :  { %v2027_v5 = vadd.f32 %v2019_v4, %v3254_v60  ;;  %v2032_v2 = vsel %vm139_vm0, %v2028_v3, 0.0  ;;  %v2038_v6 = vmul.f32 %v2028_v3, %v2028_v3  ;;  %v1218_v60 = vld [vmem:[%s3449_s21 + $0x10] sm:$0xff]  ;;  %2656 = vmatpush3.msra.mxu1 %v1219_v61 }
 0xdd3   :  { %2033 = vadd.xlane.f32.xlu0 %v2032_v2  ;;  %2657 = vmatprep.subr.mxu1 %v1218_v60 }
 0xdd4   :  { %v2029_v7 = vsel %vm139_vm0, %v2027_v5, 0.0  ;;  %v2037_v10 = vmul.f32 %v2027_v5, %v2027_v5  ;;  %v2042_v9 = vsel %vm139_vm0, %v2038_v6, 0.0  ;;  %2658 = vmatpush3.msra.mxu1 %v1218_v60 }
 0xdd5   :  { %2030 = vadd.xlane.f32.xlu1 %v2029_v7  ;;  %2659 = vmatprep.subr.mxu1 %v1217_v15 }
 0xdd6   :  { %v2039_v12 = vsel %vm139_vm0, %v2037_v10, 0.0  ;;  %2660 = vmatpush3.msra.mxu1 %v1217_v15 }
 0xdd7   :  { %2043 = vadd.xlane.f32.xlu0 %v2042_v9  ;;  %2661 = vmatprep.subr.mxu1 %v1216_v16 }
 0xdd8   :  { %2662 = vmatpush3.msra.mxu1 %v1216_v16 }
 0xdd9   :  { %2040 = vadd.xlane.f32.xlu1 %v2039_v12 }
 0xe5c   :  { %v2034_v23 = vpop.xlane.xlu0 %2033 }
 0xe5d   :  { %v2036_v24 = vmul.f32 0.03125, %v2034_v23 }
 0xe5e   :  { %v2031_v8 = vpop.xlane.xlu1 %2030 }
 0xe5f   :  { %v2035_v17 = vmul.f32 0.03125, %v2031_v8  ;;  %v2048_v11 = vmul.f32 %v2036_v24, %v2036_v24  ;;  %v2052_v28 = vsub.f32 %v2028_v3, %v2036_v24  ;;  %v2391_v8 = vld [vmem:[%s3453_s25] ss:$0 sm:$0xff]  ;;  %s2772_s25 = scalar_lea.vmem %s2307_s8, 256 }
 0xe60   :  { %v2044_v27 = vpop.xlane.xlu0 %2043  ;;  %p2773_p0 = scmp.ne.s32.totalorder %s2307_s8, %s2772_s25  ;;  %p2778_p2 = scmp.lt.s32.totalorder %s2772_s25, %s2772_s25 }
 0xe61   :  { %v2046_v18 = vmul.f32 0.03125, %v2044_v27  ;;  %v2047_v29 = vmul.f32 %v2035_v17, %v2035_v17  ;;  %v2051_v38 = vsub.f32 %v2027_v5, %v2035_v17 }
 0xe62   :  { %v2041_v21 = vpop.xlane.xlu1 %2040  ;;  %p2779_p3 = por %p2778_p2, %p2777_p1 }
 0xe63   :  { %v2050_v31 = vsub.f32 %v2046_v18, %v2048_v11  ;;  %v2045_v22 = vmul.f32 0.03125, %v2041_v21  ;;  %v2392_v18 = vld [vmem:[%s3454_s26] ss:$0 sm:$0xff] }
 0xe64   :  { %p2780_p4 = pnand %p2779_p3, %p2773_p0 }
 0xe65   :  { %v2054_v25 = vadd.f32 1e-05, %v2050_v31  ;;  %v2049_v34 = vsub.f32 %v2045_v22, %v2047_v29 }
 0xe67   :  { %2764 = vrsqrt.f32 %v2054_v25  ;;  %v2053_v26 = vadd.f32 1e-05, %v2049_v34 }
 0xe69   :  { %2766 = vrsqrt.f32 %v2053_v26 }
 0xe74   :  { %v2765_v30 = vpop.eup %2764 }
 0xe75   :  { %v2058_v33 = vmul.f32 %v2765_v30, %v2052_v28 }
 0xe76   :  { %v2767_v44 = vpop.eup %2766 }
 0xe77   :  { %v2057_v49 = vmul.f32 %v2767_v44, %v2051_v38  ;;  %v2066_v35 = vmul.f32 %v2383_v32, %v2058_v33 }
 0xe79   :  { %v2065_v52 = vmul.f32 %v2383_v32, %v2057_v49  ;;  %v2074_v39 = vadd.f32 %v2384_v36, %v2066_v35 }
 0xe7b   :  { %v2073_v37 = vadd.f32 %v2384_v36, %v2065_v52 }
 0xe7d   :  { %2663 = vmatprep.mubr.msk.f32.mxu1 %vm139_vm0, %v2073_v37 }
 0xe7e   :  { %2664 = vmatmul.mubr.msk.f32.vlgmr.msra.gmra.mxu1 %vm139_vm0, %v2074_v39 }
 0xf3e   :  { %v2665_v45 = vpop.f32.mrf.mxu1 }
 0xf3f   :  { %v2159_v54 = vadd.f32 %v2665_v45, %v2385_v43 }
 0xf40   :  { %v2153_v46 = vpop.f32.mrf.mxu1 }
 0xf41   :  { %v2154_v47 = vadd.f32 %v2385_v43, %v2153_v46  ;;  %v2163_v50 = vmax.f32 %v2159_v54, 0.0 }
 0xf43   :  { %v2162_v48 = vmax.f32 %v2154_v47, 0.0 }
 0xf45   :  { %2682 = vmatprep.mubr.msk.f32.mxu0 %vm1074_vm3, %v2162_v48 }
 0xf46   :  { %2683 = vmatmul.mubr.msk.f32.vlgmr.msra.gmra.mxu0 %vm1074_vm3, %v2163_v50 }
0x1006   :  { %v2684_v53 = vpop.f32.mrf.mxu0 }
0x1007   :  { %v2248_v55 = vadd.f32 %v2684_v53, %v2388_v51 }
0x1008   :  { %v2242_v56 = vpop.f32.mrf.mxu0 }
0x1009   :  { %v2252_v58 = vadd.f32 %v2248_v55, %v2074_v39  ;;  %v2243_v59 = vadd.f32 %v2388_v51, %v2242_v56 }
0x100b   :  { %v2251_v62 = vadd.f32 %v2243_v59, %v2073_v37  ;;  %v2256_v63 = vsel %vm139_vm0, %v2252_v58, 0.0  ;;  %v2262_v0 = vmul.f32 %v2252_v58, %v2252_v58 }
0x100c   :  { %2257 = vadd.xlane.f32.xlu0 %v2256_v63 }
0x100d   :  { %v2253_v1 = vsel %vm139_vm0, %v2251_v62, 0.0  ;;  %v2261_v3 = vmul.f32 %v2251_v62, %v2251_v62  ;;  %v2266_v4 = vsel %vm139_vm0, %v2262_v0, 0.0 }
0x100e   :  { %2254 = vadd.xlane.f32.xlu1 %v2253_v1 }
0x100f   :  { %v2263_v5 = vsel %vm139_vm0, %v2261_v3, 0.0 }
0x1010   :  { %2267 = vadd.xlane.f32.xlu0 %v2266_v4 }
0x1012   :  { %2264 = vadd.xlane.f32.xlu1 %v2263_v5 }
0x1095   :  { %v2258_v2 = vpop.xlane.xlu0 %2257 }
0x1096   :  { %v2260_v6 = vmul.f32 0.03125, %v2258_v2 }
0x1097   :  { %v2255_v7 = vpop.xlane.xlu1 %2254 }
0x1098   :  { %v2259_v10 = vmul.f32 0.03125, %v2255_v7  ;;  %v2272_v12 = vmul.f32 %v2260_v6, %v2260_v6  ;;  %v2276_v23 = vsub.f32 %v2252_v58, %v2260_v6 }
0x1099   :  { %v2268_v9 = vpop.xlane.xlu0 %2267 }
0x109a   :  { %v2270_v61 = vmul.f32 0.03125, %v2268_v9  ;;  %v2271_v15 = vmul.f32 %v2259_v10, %v2259_v10  ;;  %v2275_v17 = vsub.f32 %v2251_v62, %v2259_v10 }
0x109b   :  { %v2265_v60 = vpop.xlane.xlu1 %2264 }
0x109c   :  { %v2274_v16 = vsub.f32 %v2270_v61, %v2272_v12  ;;  %v2269_v19 = vmul.f32 0.03125, %v2265_v60 }
0x109e   :  { %v2278_v20 = vadd.f32 1e-05, %v2274_v16  ;;  %v2273_v13 = vsub.f32 %v2269_v19, %v2271_v15 }
0x10a0   :  { %2768 = vrsqrt.f32 %v2278_v20  ;;  %v2277_v14 = vadd.f32 1e-05, %v2273_v13 }
0x10a2   :  { %2770 = vrsqrt.f32 %v2277_v14 }
0x10ad   :  { %v2769_v24 = vpop.eup %2768 }
0x10ae   :  { %v2282_v27 = vmul.f32 %v2769_v24, %v2276_v23 }
0x10af   :  { %v2771_v11 = vpop.eup %2770 }
0x10b0   :  { %v2281_v21 = vmul.f32 %v2771_v11, %v2275_v17  ;;  %v2290_v29 = vmul.f32 %v2391_v8, %v2282_v27 }
0x10b2   :  { %v2289_v31 = vmul.f32 %v2391_v8, %v2281_v21  ;;  %v2298_v22 = vadd.f32 %v2392_v18, %v2290_v29 }
0x10b4   :  { %v2297_v25 = vadd.f32 %v2392_v18, %v2289_v31  ;;  %2300 = vst.msk [vmem:[#allocation2 + $0x8] sm:$0xff] %vm139_vm0, %v2298_v22 }
0x10b6   :  { %2299 = vst.msk [vmem:[#allocation2] sm:$0xff] %vm139_vm0, %v2297_v25 }
0x10b7   :  { %2783 = shalt.err (!%p2780_p4)
}
0x10b8   :  { %s2799_s26 = smov 128   ;;  %s2800_s13 = smov 8  }
0x10b9   :  { %2312 = dma.vmem_to_hbm [thread:$0]  %s2307_s8, 256, %s3455_s27, [#allocation3], %s2799_s26, %s2799_s26, %s2800_s13  }
0x10ba   :  { %2792 = dma.done.wait [#allocation3], 256  }
0x10bb   :  { %2793 = vsyncadd [#allocation3], 4294967040 }
0x10bc   :  { %2316 = vsyncpa [#allocation3], 1 }

</bundles_post_ra>
